<compile_context>
chip_gen: v7x
topology: tpu7x:2x2x1
jax: 0.10.0
libtpu: 0.0.40
codegen_flags: <defaults>
</compile_context>

<pallas_src>
import jax
import jax.numpy as jnp
from jax.experimental import pallas as pl
from jax.experimental.pallas import tpu as pltpu

LANE = 128
MXU_DTYPE = jnp.bfloat16          # matmul operand dtype; accumulation stays f32


def _round_up(x, m):
    return (x + m - 1) // m * m


def _vmem_limit_bytes():
    """Per-generation scoped-VMEM limit (v7x: 64 MiB physical, v5e/v6e: 128 MiB)."""
    cap = 64 * 1024 * 1024
    try:
        cap = int(pltpu.get_tpu_info().vmem_capacity_bytes)
    except Exception:
        pass
    return min(cap * 3 // 4, 100 * 1024 * 1024)


def _pick_tile(dim, candidates=(1024, 512, 256, 128)):
    # dims fed here (Ep, Hp, 4Hp, Vp) are pre-padded multiples of 128.
    for c in candidates:
        if dim >= c and dim % c == 0:
            return c
    return dim


def _pick_tm(m):
    for c in (512, 256, 128, 64, 32, 16, 8):
        if m >= c:
            return c
    return 8


def _pick_bblk(bp):
    # Split the batch into two chunks when possible so the "parallel" batch grid
    # axis can be sharded across v7x's two TensorCores (harmless on 1-TC chips).
    if bp % 16 == 0:
        return bp // 2
    return bp


def _pick_tstep(t, bblk, hp, vmem_budget):
    # Resident: W_hh (bf16) + h/c scratch (f32).  Pipelined (2 buffers each):
    # xg block (f32) + hout block (bf16).
    fixed = hp * 4 * hp * 2 + 2 * bblk * hp * 4
    for c in (32, 16, 8, 4, 2):
        per_block = 2 * c * bblk * (4 * hp * 4 + hp * 2)
        if t % c == 0 and fixed + per_block <= vmem_budget:
            return c
    return 1


# --------------------------------------------------------------------------
# Generic tiled matmul + bias kernel (both hoisted projections).
# Accumulates directly into the f32 output block (resident across the k axis).
# --------------------------------------------------------------------------
def _matmul_bias_kernel(x_ref, w_ref, b_ref, o_ref):
    @pl.when(pl.program_id(2) == 0)
    def _():
        o_ref[...] = jnp.zeros_like(o_ref)

    o_ref[...] += jnp.dot(x_ref[...], w_ref[...],
                          preferred_element_type=jnp.float32)

    @pl.when(pl.program_id(2) == pl.num_programs(2) - 1)
    def _():
        o_ref[...] += b_ref[...]


def matmul_bias(x, w, b, vmem_limit):
    """x:(M,K) bf16 @ w:(K,N) bf16 + b:(1,N) f32 -> (M,N) f32, MXU tiled."""
    m, k = x.shape
    k2, n = w.shape
    assert k == k2 and b.shape == (1, n)
    tm = _pick_tm(m)
    mp = _round_up(m, tm)
    if mp != m:                          # never fall back to one giant M block
        x = jnp.pad(x, ((0, mp - m), (0, 0)))
    tn = _pick_tile(n)
    tk = _pick_tile(k)
    assert mp % tm == 0 and n % tn == 0 and k % tk == 0
    out = pl.pallas_call(
        _matmul_bias_kernel,
        out_shape=jax.ShapeDtypeStruct((mp, n), jnp.float32),
        grid_spec=pltpu.PrefetchScalarGridSpec(
            num_scalar_prefetch=0,
            grid=(mp // tm, n // tn, k // tk),
            in_specs=[
                pl.BlockSpec((tm, tk), lambda i, j, kk: (i, kk)),
                pl.BlockSpec((tk, tn), lambda i, j, kk: (kk, j)),
                pl.BlockSpec((1, tn), lambda i, j, kk: (0, j)),
            ],
            out_specs=pl.BlockSpec((tm, tn), lambda i, j, kk: (i, j)),
        ),
        compiler_params=pltpu.CompilerParams(
            dimension_semantics=("parallel", "parallel", "arbitrary"),
            vmem_limit_bytes=vmem_limit),
    )(x, w, b)
    return out[:m] if mp != m else out


# --------------------------------------------------------------------------
# Recurrent LSTM kernel: TSTEP timesteps per grid step, only h @ W_hh + gates.
# Grid: (batch-chunk [parallel], time-chunk [arbitrary]).
# --------------------------------------------------------------------------
def _lstm_recurrence_kernel(xg_ref, whh_ref, hout_ref, h_ref, c_ref):
    """
    xg_ref   : (TSTEP, Bblk, 4Hp) f32   precomputed x @ W_ih + (b_ih + b_hh)
    whh_ref  : (Hp, 4Hp)          bf16  fully resident in VMEM (not pipelined)
    hout_ref : (TSTEP, Bblk, Hp)  bf16  hidden states for these timesteps
    h_ref, c_ref : (Bblk, Hp) f32 VMEM  scratch carrying the recurrent state
    """
    @pl.when(pl.program_id(1) == 0)     # new batch chunk -> zero initial state
    def _():
        h_ref[...] = jnp.zeros_like(h_ref)
        c_ref[...] = jnp.zeros_like(c_ref)

    hp = h_ref.shape[1]

    def step(t, carry):
        h = h_ref[...]
        c = c_ref[...]
        # Note: W_hh is read inside the loop (not hoisted) — the MXU streams it
        # from VMEM; materializing it across the unrolled loop only adds vreg
        # pressure / spills.
        gates = xg_ref[t] + jnp.dot(h.astype(MXU_DTYPE), whh_ref[...],
                                    preferred_element_type=jnp.float32)
        # Hp is a multiple of 128 -> each gate slice is lane-aligned.
        i_g = jax.nn.sigmoid(gates[:, 0 * hp:1 * hp])
        f_g = jax.nn.sigmoid(gates[:, 1 * hp:2 * hp])
        g_g = jnp.tanh(gates[:, 2 * hp:3 * hp])
        o_g = jax.nn.sigmoid(gates[:, 3 * hp:4 * hp])
        c_new = f_g * c + i_g * g_g
        h_new = o_g * jnp.tanh(c_new)
        c_ref[...] = c_new
        h_ref[...] = h_new
        hout_ref[t] = h_new.astype(hout_ref.dtype)
        return carry

    jax.lax.fori_loop(0, xg_ref.shape[0], step, 0, unroll=True)


# --------------------------------------------------------------------------
# Forward pass (matches DecoderRNN.forward semantics).
# --------------------------------------------------------------------------
def decoder_rnn_forward(features, captions, params):
    """features: (B, E) f32, captions: (B, Tcap) int32 -> logits (B, Tcap, V)."""
    embed_w = params["embed_w"]          # (V, E)
    wih = params["wih"]                  # (E, 4H)  gate order i, f, g, o
    whh = params["whh"]                  # (H, 4H)
    bias = params["bias"]                # (1, 4H)  b_ih + b_hh
    wfc = params["wfc"]                  # (H, V)
    bfc = params["bfc"]                  # (1, V)

    B, E = features.shape
    H = whh.shape[0]
    V = wfc.shape[1]
    Ep = _round_up(E, LANE)
    Hp = _round_up(H, LANE)
    Vp = _round_up(V, LANE)
    Bp = _round_up(B, 8)                 # f32 sublane alignment for h/c state

    vmem_limit = _vmem_limit_bytes()

    # ---- glue (plain JAX): embedding gather + concat + time-major layout --
    cap = captions[:, :-1]                                          # (B, T-1)
    emb = jnp.take(embed_w, cap, axis=0)                            # (B, T-1, E)
    inputs = jnp.concatenate([features[:, None, :], emb], axis=1)   # (B, T, E)
    T = inputs.shape[1]
    xs = jnp.transpose(inputs, (1, 0, 2))                           # (T, B, E)
    xs = jnp.pad(xs, ((0, 0), (0, Bp - B), (0, Ep - E)))            # (T, Bp, Ep)
    xs = xs.astype(MXU_DTYPE)

    # ---- zero-pad weights (gate-blockwise) so slices/outputs are lane-dense;
    #      padding is exact only because the initial (h, c) is zero.  Matmul
    #      operands are cast to bf16; biases stay f32 (added post-accumulation).
    def pad_gates(w, rows, rows_p):
        w4 = w.reshape(rows, 4, H)
        w4 = jnp.pad(w4, ((0, rows_p - rows), (0, 0), (0, Hp - H)))
        return w4.reshape(rows_p, 4 * Hp)

    wih_p = pad_gates(wih, E, Ep).astype(MXU_DTYPE)                 # (Ep, 4Hp)
    whh_p = pad_gates(whh, H, Hp).astype(MXU_DTYPE)                 # (Hp, 4Hp)
    bias_p = pad_gates(bias, 1, 1)                                  # (1, 4Hp) f32
    wfc_p = jnp.pad(wfc, ((0, Hp - H), (0, Vp - V))).astype(MXU_DTYPE)  # (Hp, Vp)
    bfc_p = jnp.pad(bfc, ((0, 0), (0, Vp - V)))                     # (1, Vp) f32

    # ---- 1) input projection hoisted out of the recurrence (T*Bp MXU rows) -
    xg = matmul_bias(xs.reshape(T * Bp, Ep), wih_p, bias_p, vmem_limit)
    xg = xg.reshape(T, Bp, 4 * Hp)                                  # f32

    # ---- 2) sequential recurrence: only h @ W_hh + gates per step ----------
    bblk = _pick_bblk(Bp)
    tstep = _pick_tstep(T, bblk, Hp, vmem_limit)
    hs = pl.pallas_call(
        _lstm_recurrence_kernel,
        out_shape=jax.ShapeDtypeStruct((T, Bp, Hp), MXU_DTYPE),
        grid_spec=pltpu.PrefetchScalarGridSpec(
            num_scalar_prefetch=0,
            grid=(Bp // bblk, T // tstep),
            in_specs=[
                pl.BlockSpec((tstep, bblk, 4 * Hp), lambda b, t: (t, b, 0)),
                # Constant weight: fully resident in VMEM, no double-buffering.
                pl.BlockSpec(memory_space=pltpu.MemorySpace.VMEM),
            ],
            out_specs=pl.BlockSpec((tstep, bblk, Hp), lambda b, t: (t, b, 0)),
            scratch_shapes=[
                pltpu.VMEM((bblk, Hp), jnp.float32),   # h state
                pltpu.VMEM((bblk, Hp), jnp.float32),   # c state
            ],
        ),
        compiler_params=pltpu.CompilerParams(
            dimension_semantics=("parallel", "arbitrary"),  # batch || , time serial
            vmem_limit_bytes=vmem_limit),
    )(xg, whh_p)

    # ---- 3) vocab projection hoisted out of the loop (bf16 hs, lane-dense) -
    logits = matmul_bias(hs.reshape(T * Bp, Hp), wfc_p, bfc_p, vmem_limit)
    logits = logits.reshape(T, Bp, Vp)
    logits = jnp.transpose(logits, (1, 0, 2))[:B, :, :V]            # (B, T, V)
    return logits


# --------------------------------------------------------------------------
# Pure-JAX reference (lax.scan LSTM), bf16-matched matmuls for a tight check.
# --------------------------------------------------------------------------
def _mm(a, b):
    return jnp.dot(a.astype(MXU_DTYPE), b.astype(MXU_DTYPE),
                   preferred_element_type=jnp.float32)


def _reference_forward(features, captions, params):
    embed_w, wih, whh = params["embed_w"], params["wih"], params["whh"]
    bias, wfc, bfc = params["bias"], params["wfc"], params["bfc"]
    B = features.shape[0]
    H = whh.shape[0]
    cap = captions[:, :-1]
    emb = jnp.take(embed_w, cap, axis=0)
    inputs = jnp.concatenate([features[:, None, :], emb], axis=1)
    xs = jnp.transpose(inputs, (1, 0, 2))

    def step(carry, x):
        h, c = carry
        gates = _mm(x, wih) + _mm(h, whh) + bias
        i = jax.nn.sigmoid(gates[:, 0 * H:1 * H])
        f = jax.nn.sigmoid(gates[:, 1 * H:2 * H])
        g = jnp.tanh(gates[:, 2 * H:3 * H])
        o = jax.nn.sigmoid(gates[:, 3 * H:4 * H])
        c = f * c + i * g
        h = o * jnp.tanh(c)
        return (h, c), _mm(h, wfc) + bfc

    (_, _), outs = jax.lax.scan(step,
                                (jnp.zeros((B, H), jnp.float32),
                                 jnp.zeros((B, H), jnp.float32)), xs)
    return jnp.transpose(outs, (1, 0, 2))


def init_params(key, embed_size, hidden_size, vocab_size):
    """Deterministic init matching the PyTorch module's __init__ distributions."""
    ks = jax.random.split(key, 7)

    def xavier_uniform(k, shape):                 # PyTorch xavier on (out, in)
        fan_out, fan_in = shape
        a = jnp.sqrt(6.0 / (fan_in + fan_out))
        return jax.random.uniform(k, shape, jnp.float32, -a, a)

    lstm_k = 1.0 / jnp.sqrt(hidden_size)

    embed_w = xavier_uniform(ks[0], (vocab_size, embed_size))          # (V, E)
    w_ih = jax.random.uniform(ks[1], (4 * hidden_size, embed_size),
                              jnp.float32, -lstm_k, lstm_k)            # (4H, E)
    w_hh = jax.random.uniform(ks[2], (4 * hidden_size, hidden_size),
                              jnp.float32, -lstm_k, lstm_k)            # (4H, H)
    b_ih = jax.random.uniform(ks[3], (4 * hidden_size,),
                              jnp.float32, -lstm_k, lstm_k)
    b_hh = jax.random.uniform(ks[4], (4 * hidden_size,),
                              jnp.float32, -lstm_k, lstm_k)
    fc_w = xavier_uniform(ks[5], (vocab_size, hidden_size))            # (V, H)
    fc_k = 1.0 / jnp.sqrt(hidden_size)
    fc_b = jax.random.uniform(ks[6], (vocab_size,),
                              jnp.float32, -fc_k, fc_k)

    return {
        "embed_w": embed_w,
        "wih": w_ih.T,                      # (E, 4H), gate order i, f, g, o
        "whh": w_hh.T,                      # (H, 4H)
        "bias": (b_ih + b_hh)[None, :],     # (1, 4H)
        "wfc": fc_w.T,                      # (H, V)
        "bfc": fc_b[None, :],               # (1, V)
    }


if __name__ == "__main__":
    # Small shapes consistent with the module's forward.
    B, Tcap = 8, 8           # batch, caption length (LSTM seq len == Tcap)
    E, H, V = 32, 32, 64     # embed_size, hidden_size, vocab_size

    key = jax.random.PRNGKey(0)
    k_param, k_feat, k_cap = jax.random.split(key, 3)

    params = init_params(k_param, E, H, V)
    features = jax.random.normal(k_feat, (B, E), jnp.float32)
    captions = jax.random.randint(k_cap, (B, Tcap), 0, V, jnp.int32)

    logits = jax.jit(decoder_rnn_forward)(features, captions, params)
    logits = jax.block_until_ready(logits)

    ref = _reference_forward(features, captions, params)
    assert logits.shape == (B, Tcap, V), logits.shape
    max_err = float(jnp.max(jnp.abs(logits - ref)))
    # bf16 MXU operands -> looser tolerance (reference is bf16-matched).
    assert jnp.allclose(logits, ref, atol=5e-3, rtol=5e-3), max_err

    # TODO(synk): DecoderRNN.sample (greedy decode loop with early break) is
    # host-side control flow, not part of forward, and is not implemented here.
    print("KERNEL_OK")
</pallas_src>

<mosaic_0001>
module attributes {stable_mosaic.version = 11 : i64} {
  func.func @_matmul_bias_kernel(%arg0: i32, %arg1: i32, %arg2: i32, %arg3: memref<64x128xbf16, #tpu.memory_space<vmem>>, %arg4: memref<128x512xbf16, #tpu.memory_space<vmem>>, %arg5: memref<1x512xf32, #tpu.memory_space<vmem>>, %arg6: memref<64x512xf32, #tpu.memory_space<vmem>>) attributes {dimension_semantics = [#tpu.dimension_semantics<parallel>, #tpu.dimension_semantics<parallel>, #tpu.dimension_semantics<arbitrary>], iteration_bounds = array<i64: 1, 1, 1>, scalar_prefetch = 0 : i64, scratch_operands = 0 : i64, tpu.core_type = #tpu.core_type<tc>, window_params = [{transform_indices = @transform_0, window_bounds = array<i64: 64, 128>}, {transform_indices = @transform_1, window_bounds = array<i64: 128, 512>}, {transform_indices = @transform_2, window_bounds = array<i64: 1, 512>}, {transform_indices = @transform_3, window_bounds = array<i64: 64, 512>}]} {
    %c0_i32 = arith.constant 0 : i32
    %0 = arith.cmpi eq, %arg2, %c0_i32 : i32
    %1 = arith.extui %0 : i1 to i32
    %c0_i32_0 = arith.constant 0 : i32
    %2 = arith.cmpi ne, %1, %c0_i32_0 : i32
    scf.if %2 {
      %cst_10 = arith.constant 0.000000e+00 : f32
      %12 = vector.broadcast %cst_10 : f32 to vector<64x512xf32>
      %c0_11 = arith.constant 0 : index
      %c0_12 = arith.constant 0 : index
      %13 = vector.load %arg6[%c0_11, %c0_12] : memref<64x512xf32, #tpu.memory_space<vmem>>, vector<64x512xf32>
      tpu.vector_store %arg6[%c0_11, %c0_12], %12 {strides = array<i32>} : memref<64x512xf32, #tpu.memory_space<vmem>>, vector<64x512xf32>,
    } else {
    }
    %c0 = arith.constant 0 : index
    %c0_1 = arith.constant 0 : index
    %3 = vector.load %arg6[%c0, %c0_1] : memref<64x512xf32, #tpu.memory_space<vmem>>, vector<64x512xf32>
    %c0_2 = arith.constant 0 : index
    %c0_3 = arith.constant 0 : index
    %4 = vector.load %arg3[%c0_2, %c0_3] : memref<64x128xbf16, #tpu.memory_space<vmem>>, vector<64x128xbf16>
    %c0_4 = arith.constant 0 : index
    %c0_5 = arith.constant 0 : index
    %5 = vector.load %arg4[%c0_4, %c0_5] : memref<128x512xbf16, #tpu.memory_space<vmem>>, vector<128x512xbf16>
    %cst = arith.constant dense<0.000000e+00> : vector<64x512xf32>
    %6 = tpu.matmul %4, %5, %cst {dimension_numbers = #tpu.dot_dimension_numbers<[1], [0], [0], [1], [0, 0, 1, 1], [], []>} : vector<64x128xbf16>, vector<128x512xbf16>, vector<64x512xf32> -> vector<64x512xf32>
    %7 = arith.addf %3, %6 : vector<64x512xf32>
    %c0_6 = arith.constant 0 : index
    %c0_7 = arith.constant 0 : index
    %8 = vector.load %arg6[%c0_6, %c0_7] : memref<64x512xf32, #tpu.memory_space<vmem>>, vector<64x512xf32>
    tpu.vector_store %arg6[%c0_6, %c0_7], %7 {strides = array<i32>} : memref<64x512xf32, #tpu.memory_space<vmem>>, vector<64x512xf32>,
    %c0_i32_8 = arith.constant 0 : i32
    %9 = arith.cmpi eq, %arg2, %c0_i32_8 : i32
    %10 = arith.extui %9 : i1 to i32
    %c0_i32_9 = arith.constant 0 : i32
    %11 = arith.cmpi ne, %10, %c0_i32_9 : i32
    scf.if %11 {
      %c0_10 = arith.constant 0 : index
      %c0_11 = arith.constant 0 : index
      %12 = vector.load %arg6[%c0_10, %c0_11] : memref<64x512xf32, #tpu.memory_space<vmem>>, vector<64x512xf32>
      %c0_12 = arith.constant 0 : index
      %c0_13 = arith.constant 0 : index
      %13 = vector.load %arg5[%c0_12, %c0_13] : memref<1x512xf32, #tpu.memory_space<vmem>>, vector<1x512xf32>
      %14 = vector.broadcast %13 : vector<1x512xf32> to vector<64x512xf32>
      %15 = arith.addf %12, %14 : vector<64x512xf32>
      %c0_14 = arith.constant 0 : index
      %c0_15 = arith.constant 0 : index
      %16 = vector.load %arg6[%c0_14, %c0_15] : memref<64x512xf32, #tpu.memory_space<vmem>>, vector<64x512xf32>
      tpu.vector_store %arg6[%c0_14, %c0_15], %15 {strides = array<i32>} : memref<64x512xf32, #tpu.memory_space<vmem>>, vector<64x512xf32>,
    } else {
    }
    return
  }
  func.func @transform_0(%arg0: i32, %arg1: i32, %arg2: i32) -> (i32, i32) {
    %c0_i32 = arith.constant 0 : i32
    return %arg0, %arg2 : i32, i32
  }
  func.func @transform_1(%arg0: i32, %arg1: i32, %arg2: i32) -> (i32, i32) {
    %c0_i32 = arith.constant 0 : i32
    return %arg2, %arg1 : i32, i32
  }
  func.func @transform_2(%arg0: i32, %arg1: i32, %arg2: i32) -> (i32, i32) {
    %c0_i32 = arith.constant 0 : i32
    %c0_i32_0 = arith.constant 0 : i32
    return %c0_i32, %arg1 : i32, i32
  }
  func.func @transform_3(%arg0: i32, %arg1: i32, %arg2: i32) -> (i32, i32) {
    %c0_i32 = arith.constant 0 : i32
    return %arg0, %arg1 : i32, i32
  }
}

module attributes {stable_mosaic.version = 11 : i64} {
  func.func @_lstm_recurrence_kernel(%arg0: i32, %arg1: i32, %arg2: memref<8x8x512xf32, #tpu.memory_space<vmem>>, %arg3: memref<128x512xbf16, #tpu.memory_space<vmem>>, %arg4: memref<8x8x128xbf16, #tpu.memory_space<vmem>>, %arg5: memref<8x128xf32, #tpu.memory_space<vmem>>, %arg6: memref<8x128xf32, #tpu.memory_space<vmem>>) attributes {dimension_semantics = [#tpu.dimension_semantics<parallel>, #tpu.dimension_semantics<arbitrary>], iteration_bounds = array<i64: 1, 1>, scalar_prefetch = 0 : i64, scratch_operands = 2 : i64, tpu.core_type = #tpu.core_type<tc>, window_params = [{transform_indices = @transform_0, window_bounds = array<i64: 8, 8, 512>}, {pipeline_mode = #tpu.pipeline_mode<synchronous>, transform_indices = @transform_1, window_bounds = array<i64: 128, 512>}, {transform_indices = @transform_2, window_bounds = array<i64: 8, 8, 128>}]} {
    %c0_i32 = arith.constant 0 : i32
    %0 = arith.cmpi eq, %arg1, %c0_i32 : i32
    %1 = arith.extui %0 : i1 to i32
    %c0_i32_0 = arith.constant 0 : i32
    %2 = arith.cmpi ne, %1, %c0_i32_0 : i32
    scf.if %2 {
      %cst_144 = arith.constant 0.000000e+00 : f32
      %331 = vector.broadcast %cst_144 : f32 to vector<8x128xf32>
      %c0_145 = arith.constant 0 : index
      %c0_146 = arith.constant 0 : index
      %332 = vector.load %arg5[%c0_145, %c0_146] : memref<8x128xf32, #tpu.memory_space<vmem>>, vector<8x128xf32>
      tpu.vector_store %arg5[%c0_145, %c0_146], %331 {strides = array<i32>} : memref<8x128xf32, #tpu.memory_space<vmem>>, vector<8x128xf32>,
      %cst_147 = arith.constant 0.000000e+00 : f32
      %333 = vector.broadcast %cst_147 : f32 to vector<8x128xf32>
      %c0_148 = arith.constant 0 : index
      %c0_149 = arith.constant 0 : index
      %334 = vector.load %arg6[%c0_148, %c0_149] : memref<8x128xf32, #tpu.memory_space<vmem>>, vector<8x128xf32>
      tpu.vector_store %arg6[%c0_148, %c0_149], %333 {strides = array<i32>} : memref<8x128xf32, #tpu.memory_space<vmem>>, vector<8x128xf32>,
    } else {
    }
    %c0_i32_1 = arith.constant 0 : i32
    %c0 = arith.constant 0 : index
    %c0_2 = arith.constant 0 : index
    %3 = vector.load %arg5[%c0, %c0_2] : memref<8x128xf32, #tpu.memory_space<vmem>>, vector<8x128xf32>
    %c0_3 = arith.constant 0 : index
    %c0_4 = arith.constant 0 : index
    %4 = vector.load %arg6[%c0_3, %c0_4] : memref<8x128xf32, #tpu.memory_space<vmem>>, vector<8x128xf32>
    %5 = arith.index_cast %c0_i32_1 : i32 to index
    %c0_5 = arith.constant 0 : index
    %c0_6 = arith.constant 0 : index
    %6 = vector.load %arg2[%5, %c0_5, %c0_6] : memref<8x8x512xf32, #tpu.memory_space<vmem>>, vector<1x8x512xf32>
    %7 = vector.shape_cast %6 : vector<1x8x512xf32> to vector<8x512xf32>
    %8 = arith.truncf %3 : vector<8x128xf32> to vector<8x128xbf16>
    %c0_7 = arith.constant 0 : index
    %c0_8 = arith.constant 0 : index
    %9 = vector.load %arg3[%c0_7, %c0_8] : memref<128x512xbf16, #tpu.memory_space<vmem>>, vector<128x512xbf16>
    %cst = arith.constant dense<0.000000e+00> : vector<8x512xf32>
    %10 = tpu.matmul %8, %9, %cst {dimension_numbers = #tpu.dot_dimension_numbers<[1], [0], [0], [1], [0, 0, 1, 1], [], []>} : vector<8x128xbf16>, vector<128x512xbf16>, vector<8x512xf32> -> vector<8x512xf32>
    %11 = arith.addf %7, %10 : vector<8x512xf32>
    %12 = vector.extract_strided_slice %11 {offsets = [0, 0], sizes = [8, 128], strides = [1, 1]} : vector<8x512xf32> to vector<8x128xf32>
    %13 = arith.negf %12 : vector<8x128xf32>
    %14 = math.exp %13 : vector<8x128xf32>
    %cst_9 = arith.constant 1.000000e+00 : f32
    %15 = vector.broadcast %cst_9 : f32 to vector<8x128xf32>
    %16 = arith.addf %15, %14 : vector<8x128xf32>
    %17 = arith.divf %15, %16 : vector<8x128xf32>
    %18 = vector.extract_strided_slice %11 {offsets = [0, 128], sizes = [8, 128], strides = [1, 1]} : vector<8x512xf32> to vector<8x128xf32>
    %19 = arith.negf %18 : vector<8x128xf32>
    %20 = math.exp %19 : vector<8x128xf32>
    %cst_10 = arith.constant 1.000000e+00 : f32
    %21 = vector.broadcast %cst_10 : f32 to vector<8x128xf32>
    %22 = arith.addf %21, %20 : vector<8x128xf32>
    %23 = arith.divf %21, %22 : vector<8x128xf32>
    %24 = vector.extract_strided_slice %11 {offsets = [0, 256], sizes = [8, 128], strides = [1, 1]} : vector<8x512xf32> to vector<8x128xf32>
    %25 = math.tanh %24 : vector<8x128xf32>
    %26 = vector.extract_strided_slice %11 {offsets = [0, 384], sizes = [8, 128], strides = [1, 1]} : vector<8x512xf32> to vector<8x128xf32>
    %27 = arith.negf %26 : vector<8x128xf32>
    %28 = math.exp %27 : vector<8x128xf32>
    %cst_11 = arith.constant 1.000000e+00 : f32
    %29 = vector.broadcast %cst_11 : f32 to vector<8x128xf32>
    %30 = arith.addf %29, %28 : vector<8x128xf32>
    %31 = arith.divf %29, %30 : vector<8x128xf32>
    %32 = arith.mulf %23, %4 : vector<8x128xf32>
    %33 = arith.mulf %17, %25 : vector<8x128xf32>
    %34 = arith.addf %32, %33 : vector<8x128xf32>
    %35 = math.tanh %34 : vector<8x128xf32>
    %36 = arith.mulf %31, %35 : vector<8x128xf32>
    %c0_12 = arith.constant 0 : index
    %c0_13 = arith.constant 0 : index
    %37 = vector.load %arg6[%c0_12, %c0_13] : memref<8x128xf32, #tpu.memory_space<vmem>>, vector<8x128xf32>
    tpu.vector_store %arg6[%c0_12, %c0_13], %34 {strides = array<i32>} : memref<8x128xf32, #tpu.memory_space<vmem>>, vector<8x128xf32>,
    %c0_14 = arith.constant 0 : index
    %c0_15 = arith.constant 0 : index
    %38 = vector.load %arg5[%c0_14, %c0_15] : memref<8x128xf32, #tpu.memory_space<vmem>>, vector<8x128xf32>
    tpu.vector_store %arg5[%c0_14, %c0_15], %36 {strides = array<i32>} : memref<8x128xf32, #tpu.memory_space<vmem>>, vector<8x128xf32>,
    %39 = arith.truncf %36 : vector<8x128xf32> to vector<8x128xbf16>
    %40 = arith.index_cast %c0_i32_1 : i32 to index
    %c0_16 = arith.constant 0 : index
    %c0_17 = arith.constant 0 : index
    %41 = vector.load %arg4[%40, %c0_16, %c0_17] : memref<8x8x128xbf16, #tpu.memory_space<vmem>>, vector<1x8x128xbf16>
    %42 = vector.shape_cast %41 : vector<1x8x128xbf16> to vector<8x128xbf16>
    %43 = vector.shape_cast %39 : vector<8x128xbf16> to vector<1x8x128xbf16>
    tpu.vector_store %arg4[%40, %c0_16, %c0_17], %43 {strides = array<i32>} : memref<8x8x128xbf16, #tpu.memory_space<vmem>>, vector<1x8x128xbf16>,
    %c1_i32 = arith.constant 1 : i32
    %c0_18 = arith.constant 0 : index
    %c0_19 = arith.constant 0 : index
    %44 = vector.load %arg5[%c0_18, %c0_19] : memref<8x128xf32, #tpu.memory_space<vmem>>, vector<8x128xf32>
    %c0_20 = arith.constant 0 : index
    %c0_21 = arith.constant 0 : index
    %45 = vector.load %arg6[%c0_20, %c0_21] : memref<8x128xf32, #tpu.memory_space<vmem>>, vector<8x128xf32>
    %46 = arith.index_cast %c1_i32 : i32 to index
    %c0_22 = arith.constant 0 : index
    %c0_23 = arith.constant 0 : index
    %47 = vector.load %arg2[%46, %c0_22, %c0_23] : memref<8x8x512xf32, #tpu.memory_space<vmem>>, vector<1x8x512xf32>
    %48 = vector.shape_cast %47 : vector<1x8x512xf32> to vector<8x512xf32>
    %49 = arith.truncf %44 : vector<8x128xf32> to vector<8x128xbf16>
    %c0_24 = arith.constant 0 : index
    %c0_25 = arith.constant 0 : index
    %50 = vector.load %arg3[%c0_24, %c0_25] : memref<128x512xbf16, #tpu.memory_space<vmem>>, vector<128x512xbf16>
    %cst_26 = arith.constant dense<0.000000e+00> : vector<8x512xf32>
    %51 = tpu.matmul %49, %50, %cst_26 {dimension_numbers = #tpu.dot_dimension_numbers<[1], [0], [0], [1], [0, 0, 1, 1], [], []>} : vector<8x128xbf16>, vector<128x512xbf16>, vector<8x512xf32> -> vector<8x512xf32>
    %52 = arith.addf %48, %51 : vector<8x512xf32>
    %53 = vector.extract_strided_slice %52 {offsets = [0, 0], sizes = [8, 128], strides = [1, 1]} : vector<8x512xf32> to vector<8x128xf32>
    %54 = arith.negf %53 : vector<8x128xf32>
    %55 = math.exp %54 : vector<8x128xf32>
    %cst_27 = arith.constant 1.000000e+00 : f32
    %56 = vector.broadcast %cst_27 : f32 to vector<8x128xf32>
    %57 = arith.addf %56, %55 : vector<8x128xf32>
    %58 = arith.divf %56, %57 : vector<8x128xf32>
    %59 = vector.extract_strided_slice %52 {offsets = [0, 128], sizes = [8, 128], strides = [1, 1]} : vector<8x512xf32> to vector<8x128xf32>
    %60 = arith.negf %59 : vector<8x128xf32>
    %61 = math.exp %60 : vector<8x128xf32>
    %cst_28 = arith.constant 1.000000e+00 : f32
    %62 = vector.broadcast %cst_28 : f32 to vector<8x128xf32>
    %63 = arith.addf %62, %61 : vector<8x128xf32>
    %64 = arith.divf %62, %63 : vector<8x128xf32>
    %65 = vector.extract_strided_slice %52 {offsets = [0, 256], sizes = [8, 128], strides = [1, 1]} : vector<8x512xf32> to vector<8x128xf32>
    %66 = math.tanh %65 : vector<8x128xf32>
    %67 = vector.extract_strided_slice %52 {offsets = [0, 384], sizes = [8, 128], strides = [1, 1]} : vector<8x512xf32> to vector<8x128xf32>
    %68 = arith.negf %67 : vector<8x128xf32>
    %69 = math.exp %68 : vector<8x128xf32>
    %cst_29 = arith.constant 1.000000e+00 : f32
    %70 = vector.broadcast %cst_29 : f32 to vector<8x128xf32>
    %71 = arith.addf %70, %69 : vector<8x128xf32>
    %72 = arith.divf %70, %71 : vector<8x128xf32>
    %73 = arith.mulf %64, %45 : vector<8x128xf32>
    %74 = arith.mulf %58, %66 : vector<8x128xf32>
    %75 = arith.addf %73, %74 : vector<8x128xf32>
    %76 = math.tanh %75 : vector<8x128xf32>
    %77 = arith.mulf %72, %76 : vector<8x128xf32>
    %c0_30 = arith.constant 0 : index
    %c0_31 = arith.constant 0 : index
    %78 = vector.load %arg6[%c0_30, %c0_31] : memref<8x128xf32, #tpu.memory_space<vmem>>, vector<8x128xf32>
    tpu.vector_store %arg6[%c0_30, %c0_31], %75 {strides = array<i32>} : memref<8x128xf32, #tpu.memory_space<vmem>>, vector<8x128xf32>,
    %c0_32 = arith.constant 0 : index
    %c0_33 = arith.constant 0 : index
    %79 = vector.load %arg5[%c0_32, %c0_33] : memref<8x128xf32, #tpu.memory_space<vmem>>, vector<8x128xf32>
    tpu.vector_store %arg5[%c0_32, %c0_33], %77 {strides = array<i32>} : memref<8x128xf32, #tpu.memory_space<vmem>>, vector<8x128xf32>,
    %80 = arith.truncf %77 : vector<8x128xf32> to vector<8x128xbf16>
    %81 = arith.index_cast %c1_i32 : i32 to index
    %c0_34 = arith.constant 0 : index
    %c0_35 = arith.constant 0 : index
    %82 = vector.load %arg4[%81, %c0_34, %c0_35] : memref<8x8x128xbf16, #tpu.memory_space<vmem>>, vector<1x8x128xbf16>
    %83 = vector.shape_cast %82 : vector<1x8x128xbf16> to vector<8x128xbf16>
    %84 = vector.shape_cast %80 : vector<8x128xbf16> to vector<1x8x128xbf16>
    tpu.vector_store %arg4[%81, %c0_34, %c0_35], %84 {strides = array<i32>} : memref<8x8x128xbf16, #tpu.memory_space<vmem>>, vector<1x8x128xbf16>,
    %c2_i32 = arith.constant 2 : i32
    %c0_36 = arith.constant 0 : index
    %c0_37 = arith.constant 0 : index
    %85 = vector.load %arg5[%c0_36, %c0_37] : memref<8x128xf32, #tpu.memory_space<vmem>>, vector<8x128xf32>
    %c0_38 = arith.constant 0 : index
    %c0_39 = arith.constant 0 : index
    %86 = vector.load %arg6[%c0_38, %c0_39] : memref<8x128xf32, #tpu.memory_space<vmem>>, vector<8x128xf32>
    %87 = arith.index_cast %c2_i32 : i32 to index
    %c0_40 = arith.constant 0 : index
    %c0_41 = arith.constant 0 : index
    %88 = vector.load %arg2[%87, %c0_40, %c0_41] : memref<8x8x512xf32, #tpu.memory_space<vmem>>, vector<1x8x512xf32>
    %89 = vector.shape_cast %88 : vector<1x8x512xf32> to vector<8x512xf32>
    %90 = arith.truncf %85 : vector<8x128xf32> to vector<8x128xbf16>
    %c0_42 = arith.constant 0 : index
    %c0_43 = arith.constant 0 : index
    %91 = vector.load %arg3[%c0_42, %c0_43] : memref<128x512xbf16, #tpu.memory_space<vmem>>, vector<128x512xbf16>
    %cst_44 = arith.constant dense<0.000000e+00> : vector<8x512xf32>
    %92 = tpu.matmul %90, %91, %cst_44 {dimension_numbers = #tpu.dot_dimension_numbers<[1], [0], [0], [1], [0, 0, 1, 1], [], []>} : vector<8x128xbf16>, vector<128x512xbf16>, vector<8x512xf32> -> vector<8x512xf32>
    %93 = arith.addf %89, %92 : vector<8x512xf32>
    %94 = vector.extract_strided_slice %93 {offsets = [0, 0], sizes = [8, 128], strides = [1, 1]} : vector<8x512xf32> to vector<8x128xf32>
    %95 = arith.negf %94 : vector<8x128xf32>
    %96 = math.exp %95 : vector<8x128xf32>
    %cst_45 = arith.constant 1.000000e+00 : f32
    %97 = vector.broadcast %cst_45 : f32 to vector<8x128xf32>
    %98 = arith.addf %97, %96 : vector<8x128xf32>
    %99 = arith.divf %97, %98 : vector<8x128xf32>
    %100 = vector.extract_strided_slice %93 {offsets = [0, 128], sizes = [8, 128], strides = [1, 1]} : vector<8x512xf32> to vector<8x128xf32>
    %101 = arith.negf %100 : vector<8x128xf32>
    %102 = math.exp %101 : vector<8x128xf32>
    %cst_46 = arith.constant 1.000000e+00 : f32
    %103 = vector.broadcast %cst_46 : f32 to vector<8x128xf32>
    %104 = arith.addf %103, %102 : vector<8x128xf32>
    %105 = arith.divf %103, %104 : vector<8x128xf32>
    %106 = vector.extract_strided_slice %93 {offsets = [0, 256], sizes = [8, 128], strides = [1, 1]} : vector<8x512xf32> to vector<8x128xf32>
    %107 = math.tanh %106 : vector<8x128xf32>
    %108 = vector.extract_strided_slice %93 {offsets = [0, 384], sizes = [8, 128], strides = [1, 1]} : vector<8x512xf32> to vector<8x128xf32>
    %109 = arith.negf %108 : vector<8x128xf32>
    %110 = math.exp %109 : vector<8x128xf32>
    %cst_47 = arith.constant 1.000000e+00 : f32
    %111 = vector.broadcast %cst_47 : f32 to vector<8x128xf32>
    %112 = arith.addf %111, %110 : vector<8x128xf32>
    %113 = arith.divf %111, %112 : vector<8x128xf32>
    %114 = arith.mulf %105, %86 : vector<8x128xf32>
    %115 = arith.mulf %99, %107 : vector<8x128xf32>
    %116 = arith.addf %114, %115 : vector<8x128xf32>
    %117 = math.tanh %116 : vector<8x128xf32>
    %118 = arith.mulf %113, %117 : vector<8x128xf32>
    %c0_48 = arith.constant 0 : index
    %c0_49 = arith.constant 0 : index
    %119 = vector.load %arg6[%c0_48, %c0_49] : memref<8x128xf32, #tpu.memory_space<vmem>>, vector<8x128xf32>
    tpu.vector_store %arg6[%c0_48, %c0_49], %116 {strides = array<i32>} : memref<8x128xf32, #tpu.memory_space<vmem>>, vector<8x128xf32>,
    %c0_50 = arith.constant 0 : index
    %c0_51 = arith.constant 0 : index
    %120 = vector.load %arg5[%c0_50, %c0_51] : memref<8x128xf32, #tpu.memory_space<vmem>>, vector<8x128xf32>
    tpu.vector_store %arg5[%c0_50, %c0_51], %118 {strides = array<i32>} : memref<8x128xf32, #tpu.memory_space<vmem>>, vector<8x128xf32>,
    %121 = arith.truncf %118 : vector<8x128xf32> to vector<8x128xbf16>
    %122 = arith.index_cast %c2_i32 : i32 to index
    %c0_52 = arith.constant 0 : index
    %c0_53 = arith.constant 0 : index
    %123 = vector.load %arg4[%122, %c0_52, %c0_53] : memref<8x8x128xbf16, #tpu.memory_space<vmem>>, vector<1x8x128xbf16>
    %124 = vector.shape_cast %123 : vector<1x8x128xbf16> to vector<8x128xbf16>
    %125 = vector.shape_cast %121 : vector<8x128xbf16> to vector<1x8x128xbf16>
    tpu.vector_store %arg4[%122, %c0_52, %c0_53], %125 {strides = array<i32>} : memref<8x8x128xbf16, #tpu.memory_space<vmem>>, vector<1x8x128xbf16>,
    %c3_i32 = arith.constant 3 : i32
    %c0_54 = arith.constant 0 : index
    %c0_55 = arith.constant 0 : index
    %126 = vector.load %arg5[%c0_54, %c0_55] : memref<8x128xf32, #tpu.memory_space<vmem>>, vector<8x128xf32>
    %c0_56 = arith.constant 0 : index
    %c0_57 = arith.constant 0 : index
    %127 = vector.load %arg6[%c0_56, %c0_57] : memref<8x128xf32, #tpu.memory_space<vmem>>, vector<8x128xf32>
    %128 = arith.index_cast %c3_i32 : i32 to index
    %c0_58 = arith.constant 0 : index
    %c0_59 = arith.constant 0 : index
    %129 = vector.load %arg2[%128, %c0_58, %c0_59] : memref<8x8x512xf32, #tpu.memory_space<vmem>>, vector<1x8x512xf32>
    %130 = vector.shape_cast %129 : vector<1x8x512xf32> to vector<8x512xf32>
    %131 = arith.truncf %126 : vector<8x128xf32> to vector<8x128xbf16>
    %c0_60 = arith.constant 0 : index
    %c0_61 = arith.constant 0 : index
    %132 = vector.load %arg3[%c0_60, %c0_61] : memref<128x512xbf16, #tpu.memory_space<vmem>>, vector<128x512xbf16>
    %cst_62 = arith.constant dense<0.000000e+00> : vector<8x512xf32>
    %133 = tpu.matmul %131, %132, %cst_62 {dimension_numbers = #tpu.dot_dimension_numbers<[1], [0], [0], [1], [0, 0, 1, 1], [], []>} : vector<8x128xbf16>, vector<128x512xbf16>, vector<8x512xf32> -> vector<8x512xf32>
    %134 = arith.addf %130, %133 : vector<8x512xf32>
    %135 = vector.extract_strided_slice %134 {offsets = [0, 0], sizes = [8, 128], strides = [1, 1]} : vector<8x512xf32> to vector<8x128xf32>
    %136 = arith.negf %135 : vector<8x128xf32>
    %137 = math.exp %136 : vector<8x128xf32>
    %cst_63 = arith.constant 1.000000e+00 : f32
    %138 = vector.broadcast %cst_63 : f32 to vector<8x128xf32>
    %139 = arith.addf %138, %137 : vector<8x128xf32>
    %140 = arith.divf %138, %139 : vector<8x128xf32>
    %141 = vector.extract_strided_slice %134 {offsets = [0, 128], sizes = [8, 128], strides = [1, 1]} : vector<8x512xf32> to vector<8x128xf32>
    %142 = arith.negf %141 : vector<8x128xf32>
    %143 = math.exp %142 : vector<8x128xf32>
    %cst_64 = arith.constant 1.000000e+00 : f32
    %144 = vector.broadcast %cst_64 : f32 to vector<8x128xf32>
    %145 = arith.addf %144, %143 : vector<8x128xf32>
    %146 = arith.divf %144, %145 : vector<8x128xf32>
    %147 = vector.extract_strided_slice %134 {offsets = [0, 256], sizes = [8, 128], strides = [1, 1]} : vector<8x512xf32> to vector<8x128xf32>
    %148 = math.tanh %147 : vector<8x128xf32>
    %149 = vector.extract_strided_slice %134 {offsets = [0, 384], sizes = [8, 128], strides = [1, 1]} : vector<8x512xf32> to vector<8x128xf32>
    %150 = arith.negf %149 : vector<8x128xf32>
    %151 = math.exp %150 : vector<8x128xf32>
    %cst_65 = arith.constant 1.000000e+00 : f32
    %152 = vector.broadcast %cst_65 : f32 to vector<8x128xf32>
    %153 = arith.addf %152, %151 : vector<8x128xf32>
    %154 = arith.divf %152, %153 : vector<8x128xf32>
    %155 = arith.mulf %146, %127 : vector<8x128xf32>
    %156 = arith.mulf %140, %148 : vector<8x128xf32>
    %157 = arith.addf %155, %156 : vector<8x128xf32>
    %158 = math.tanh %157 : vector<8x128xf32>
    %159 = arith.mulf %154, %158 : vector<8x128xf32>
    %c0_66 = arith.constant 0 : index
    %c0_67 = arith.constant 0 : index
    %160 = vector.load %arg6[%c0_66, %c0_67] : memref<8x128xf32, #tpu.memory_space<vmem>>, vector<8x128xf32>
    tpu.vector_store %arg6[%c0_66, %c0_67], %157 {strides = array<i32>} : memref<8x128xf32, #tpu.memory_space<vmem>>, vector<8x128xf32>,
    %c0_68 = arith.constant 0 : index
    %c0_69 = arith.constant 0 : index
    %161 = vector.load %arg5[%c0_68, %c0_69] : memref<8x128xf32, #tpu.memory_space<vmem>>, vector<8x128xf32>
    tpu.vector_store %arg5[%c0_68, %c0_69], %159 {strides = array<i32>} : memref<8x128xf32, #tpu.memory_space<vmem>>, vector<8x128xf32>,
    %162 = arith.truncf %159 : vector<8x128xf32> to vector<8x128xbf16>
    %163 = arith.index_cast %c3_i32 : i32 to index
    %c0_70 = arith.constant 0 : index
    %c0_71 = arith.constant 0 : index
    %164 = vector.load %arg4[%163, %c0_70, %c0_71] : memref<8x8x128xbf16, #tpu.memory_space<vmem>>, vector<1x8x128xbf16>
    %165 = vector.shape_cast %164 : vector<1x8x128xbf16> to vector<8x128xbf16>
    %166 = vector.shape_cast %162 : vector<8x128xbf16> to vector<1x8x128xbf16>
    tpu.vector_store %arg4[%163, %c0_70, %c0_71], %166 {strides = array<i32>} : memref<8x8x128xbf16, #tpu.memory_space<vmem>>, vector<1x8x128xbf16>,
    %c4_i32 = arith.constant 4 : i32
    %c0_72 = arith.constant 0 : index
    %c0_73 = arith.constant 0 : index
    %167 = vector.load %arg5[%c0_72, %c0_73] : memref<8x128xf32, #tpu.memory_space<vmem>>, vector<8x128xf32>
    %c0_74 = arith.constant 0 : index
    %c0_75 = arith.constant 0 : index
    %168 = vector.load %arg6[%c0_74, %c0_75] : memref<8x128xf32, #tpu.memory_space<vmem>>, vector<8x128xf32>
    %169 = arith.index_cast %c4_i32 : i32 to index
    %c0_76 = arith.constant 0 : index
    %c0_77 = arith.constant 0 : index
    %170 = vector.load %arg2[%169, %c0_76, %c0_77] : memref<8x8x512xf32, #tpu.memory_space<vmem>>, vector<1x8x512xf32>
    %171 = vector.shape_cast %170 : vector<1x8x512xf32> to vector<8x512xf32>
    %172 = arith.truncf %167 : vector<8x128xf32> to vector<8x128xbf16>
    %c0_78 = arith.constant 0 : index
    %c0_79 = arith.constant 0 : index
    %173 = vector.load %arg3[%c0_78, %c0_79] : memref<128x512xbf16, #tpu.memory_space<vmem>>, vector<128x512xbf16>
    %cst_80 = arith.constant dense<0.000000e+00> : vector<8x512xf32>
    %174 = tpu.matmul %172, %173, %cst_80 {dimension_numbers = #tpu.dot_dimension_numbers<[1], [0], [0], [1], [0, 0, 1, 1], [], []>} : vector<8x128xbf16>, vector<128x512xbf16>, vector<8x512xf32> -> vector<8x512xf32>
    %175 = arith.addf %171, %174 : vector<8x512xf32>
    %176 = vector.extract_strided_slice %175 {offsets = [0, 0], sizes = [8, 128], strides = [1, 1]} : vector<8x512xf32> to vector<8x128xf32>
    %177 = arith.negf %176 : vector<8x128xf32>
    %178 = math.exp %177 : vector<8x128xf32>
    %cst_81 = arith.constant 1.000000e+00 : f32
    %179 = vector.broadcast %cst_81 : f32 to vector<8x128xf32>
    %180 = arith.addf %179, %178 : vector<8x128xf32>
    %181 = arith.divf %179, %180 : vector<8x128xf32>
    %182 = vector.extract_strided_slice %175 {offsets = [0, 128], sizes = [8, 128], strides = [1, 1]} : vector<8x512xf32> to vector<8x128xf32>
    %183 = arith.negf %182 : vector<8x128xf32>
    %184 = math.exp %183 : vector<8x128xf32>
    %cst_82 = arith.constant 1.000000e+00 : f32
    %185 = vector.broadcast %cst_82 : f32 to vector<8x128xf32>
    %186 = arith.addf %185, %184 : vector<8x128xf32>
    %187 = arith.divf %185, %186 : vector<8x128xf32>
    %188 = vector.extract_strided_slice %175 {offsets = [0, 256], sizes = [8, 128], strides = [1, 1]} : vector<8x512xf32> to vector<8x128xf32>
    %189 = math.tanh %188 : vector<8x128xf32>
    %190 = vector.extract_strided_slice %175 {offsets = [0, 384], sizes = [8, 128], strides = [1, 1]} : vector<8x512xf32> to vector<8x128xf32>
    %191 = arith.negf %190 : vector<8x128xf32>
    %192 = math.exp %191 : vector<8x128xf32>
    %cst_83 = arith.constant 1.000000e+00 : f32
    %193 = vector.broadcast %cst_83 : f32 to vector<8x128xf32>
    %194 = arith.addf %193, %192 : vector<8x128xf32>
    %195 = arith.divf %193, %194 : vector<8x128xf32>
    %196 = arith.mulf %187, %168 : vector<8x128xf32>
    %197 = arith.mulf %181, %189 : vector<8x128xf32>
    %198 = arith.addf %196, %197 : vector<8x128xf32>
    %199 = math.tanh %198 : vector<8x128xf32>
    %200 = arith.mulf %195, %199 : vector<8x128xf32>
    %c0_84 = arith.constant 0 : index
    %c0_85 = arith.constant 0 : index
    %201 = vector.load %arg6[%c0_84, %c0_85] : memref<8x128xf32, #tpu.memory_space<vmem>>, vector<8x128xf32>
    tpu.vector_store %arg6[%c0_84, %c0_85], %198 {strides = array<i32>} : memref<8x128xf32, #tpu.memory_space<vmem>>, vector<8x128xf32>,
    %c0_86 = arith.constant 0 : index
    %c0_87 = arith.constant 0 : index
    %202 = vector.load %arg5[%c0_86, %c0_87] : memref<8x128xf32, #tpu.memory_space<vmem>>, vector<8x128xf32>
    tpu.vector_store %arg5[%c0_86, %c0_87], %200 {strides = array<i32>} : memref<8x128xf32, #tpu.memory_space<vmem>>, vector<8x128xf32>,
    %203 = arith.truncf %200 : vector<8x128xf32> to vector<8x128xbf16>
    %204 = arith.index_cast %c4_i32 : i32 to index
    %c0_88 = arith.constant 0 : index
    %c0_89 = arith.constant 0 : index
    %205 = vector.load %arg4[%204, %c0_88, %c0_89] : memref<8x8x128xbf16, #tpu.memory_space<vmem>>, vector<1x8x128xbf16>
    %206 = vector.shape_cast %205 : vector<1x8x128xbf16> to vector<8x128xbf16>
    %207 = vector.shape_cast %203 : vector<8x128xbf16> to vector<1x8x128xbf16>
    tpu.vector_store %arg4[%204, %c0_88, %c0_89], %207 {strides = array<i32>} : memref<8x8x128xbf16, #tpu.memory_space<vmem>>, vector<1x8x128xbf16>,
    %c5_i32 = arith.constant 5 : i32
    %c0_90 = arith.constant 0 : index
    %c0_91 = arith.constant 0 : index
    %208 = vector.load %arg5[%c0_90, %c0_91] : memref<8x128xf32, #tpu.memory_space<vmem>>, vector<8x128xf32>
    %c0_92 = arith.constant 0 : index
    %c0_93 = arith.constant 0 : index
    %209 = vector.load %arg6[%c0_92, %c0_93] : memref<8x128xf32, #tpu.memory_space<vmem>>, vector<8x128xf32>
    %210 = arith.index_cast %c5_i32 : i32 to index
    %c0_94 = arith.constant 0 : index
    %c0_95 = arith.constant 0 : index
    %211 = vector.load %arg2[%210, %c0_94, %c0_95] : memref<8x8x512xf32, #tpu.memory_space<vmem>>, vector<1x8x512xf32>
    %212 = vector.shape_cast %211 : vector<1x8x512xf32> to vector<8x512xf32>
    %213 = arith.truncf %208 : vector<8x128xf32> to vector<8x128xbf16>
    %c0_96 = arith.constant 0 : index
    %c0_97 = arith.constant 0 : index
    %214 = vector.load %arg3[%c0_96, %c0_97] : memref<128x512xbf16, #tpu.memory_space<vmem>>, vector<128x512xbf16>
    %cst_98 = arith.constant dense<0.000000e+00> : vector<8x512xf32>
    %215 = tpu.matmul %213, %214, %cst_98 {dimension_numbers = #tpu.dot_dimension_numbers<[1], [0], [0], [1], [0, 0, 1, 1], [], []>} : vector<8x128xbf16>, vector<128x512xbf16>, vector<8x512xf32> -> vector<8x512xf32>
    %216 = arith.addf %212, %215 : vector<8x512xf32>
    %217 = vector.extract_strided_slice %216 {offsets = [0, 0], sizes = [8, 128], strides = [1, 1]} : vector<8x512xf32> to vector<8x128xf32>
    %218 = arith.negf %217 : vector<8x128xf32>
    %219 = math.exp %218 : vector<8x128xf32>
    %cst_99 = arith.constant 1.000000e+00 : f32
    %220 = vector.broadcast %cst_99 : f32 to vector<8x128xf32>
    %221 = arith.addf %220, %219 : vector<8x128xf32>
    %222 = arith.divf %220, %221 : vector<8x128xf32>
    %223 = vector.extract_strided_slice %216 {offsets = [0, 128], sizes = [8, 128], strides = [1, 1]} : vector<8x512xf32> to vector<8x128xf32>
    %224 = arith.negf %223 : vector<8x128xf32>
    %225 = math.exp %224 : vector<8x128xf32>
    %cst_100 = arith.constant 1.000000e+00 : f32
    %226 = vector.broadcast %cst_100 : f32 to vector<8x128xf32>
    %227 = arith.addf %226, %225 : vector<8x128xf32>
    %228 = arith.divf %226, %227 : vector<8x128xf32>
    %229 = vector.extract_strided_slice %216 {offsets = [0, 256], sizes = [8, 128], strides = [1, 1]} : vector<8x512xf32> to vector<8x128xf32>
    %230 = math.tanh %229 : vector<8x128xf32>
    %231 = vector.extract_strided_slice %216 {offsets = [0, 384], sizes = [8, 128], strides = [1, 1]} : vector<8x512xf32> to vector<8x128xf32>
    %232 = arith.negf %231 : vector<8x128xf32>
    %233 = math.exp %232 : vector<8x128xf32>
    %cst_101 = arith.constant 1.000000e+00 : f32
    %234 = vector.broadcast %cst_101 : f32 to vector<8x128xf32>
    %235 = arith.addf %234, %233 : vector<8x128xf32>
    %236 = arith.divf %234, %235 : vector<8x128xf32>
    %237 = arith.mulf %228, %209 : vector<8x128xf32>
    %238 = arith.mulf %222, %230 : vector<8x128xf32>
    %239 = arith.addf %237, %238 : vector<8x128xf32>
    %240 = math.tanh %239 : vector<8x128xf32>
    %241 = arith.mulf %236, %240 : vector<8x128xf32>
    %c0_102 = arith.constant 0 : index
    %c0_103 = arith.constant 0 : index
    %242 = vector.load %arg6[%c0_102, %c0_103] : memref<8x128xf32, #tpu.memory_space<vmem>>, vector<8x128xf32>
    tpu.vector_store %arg6[%c0_102, %c0_103], %239 {strides = array<i32>} : memref<8x128xf32, #tpu.memory_space<vmem>>, vector<8x128xf32>,
    %c0_104 = arith.constant 0 : index
    %c0_105 = arith.constant 0 : index
    %243 = vector.load %arg5[%c0_104, %c0_105] : memref<8x128xf32, #tpu.memory_space<vmem>>, vector<8x128xf32>
    tpu.vector_store %arg5[%c0_104, %c0_105], %241 {strides = array<i32>} : memref<8x128xf32, #tpu.memory_space<vmem>>, vector<8x128xf32>,
    %244 = arith.truncf %241 : vector<8x128xf32> to vector<8x128xbf16>
    %245 = arith.index_cast %c5_i32 : i32 to index
    %c0_106 = arith.constant 0 : index
    %c0_107 = arith.constant 0 : index
    %246 = vector.load %arg4[%245, %c0_106, %c0_107] : memref<8x8x128xbf16, #tpu.memory_space<vmem>>, vector<1x8x128xbf16>
    %247 = vector.shape_cast %246 : vector<1x8x128xbf16> to vector<8x128xbf16>
    %248 = vector.shape_cast %244 : vector<8x128xbf16> to vector<1x8x128xbf16>
    tpu.vector_store %arg4[%245, %c0_106, %c0_107], %248 {strides = array<i32>} : memref<8x8x128xbf16, #tpu.memory_space<vmem>>, vector<1x8x128xbf16>,
    %c6_i32 = arith.constant 6 : i32
    %c0_108 = arith.constant 0 : index
    %c0_109 = arith.constant 0 : index
    %249 = vector.load %arg5[%c0_108, %c0_109] : memref<8x128xf32, #tpu.memory_space<vmem>>, vector<8x128xf32>
    %c0_110 = arith.constant 0 : index
    %c0_111 = arith.constant 0 : index
    %250 = vector.load %arg6[%c0_110, %c0_111] : memref<8x128xf32, #tpu.memory_space<vmem>>, vector<8x128xf32>
    %251 = arith.index_cast %c6_i32 : i32 to index
    %c0_112 = arith.constant 0 : index
    %c0_113 = arith.constant 0 : index
    %252 = vector.load %arg2[%251, %c0_112, %c0_113] : memref<8x8x512xf32, #tpu.memory_space<vmem>>, vector<1x8x512xf32>
    %253 = vector.shape_cast %252 : vector<1x8x512xf32> to vector<8x512xf32>
    %254 = arith.truncf %249 : vector<8x128xf32> to vector<8x128xbf16>
    %c0_114 = arith.constant 0 : index
    %c0_115 = arith.constant 0 : index
    %255 = vector.load %arg3[%c0_114, %c0_115] : memref<128x512xbf16, #tpu.memory_space<vmem>>, vector<128x512xbf16>
    %cst_116 = arith.constant dense<0.000000e+00> : vector<8x512xf32>
    %256 = tpu.matmul %254, %255, %cst_116 {dimension_numbers = #tpu.dot_dimension_numbers<[1], [0], [0], [1], [0, 0, 1, 1], [], []>} : vector<8x128xbf16>, vector<128x512xbf16>, vector<8x512xf32> -> vector<8x512xf32>
    %257 = arith.addf %253, %256 : vector<8x512xf32>
    %258 = vector.extract_strided_slice %257 {offsets = [0, 0], sizes = [8, 128], strides = [1, 1]} : vector<8x512xf32> to vector<8x128xf32>
    %259 = arith.negf %258 : vector<8x128xf32>
    %260 = math.exp %259 : vector<8x128xf32>
    %cst_117 = arith.constant 1.000000e+00 : f32
    %261 = vector.broadcast %cst_117 : f32 to vector<8x128xf32>
    %262 = arith.addf %261, %260 : vector<8x128xf32>
    %263 = arith.divf %261, %262 : vector<8x128xf32>
    %264 = vector.extract_strided_slice %257 {offsets = [0, 128], sizes = [8, 128], strides = [1, 1]} : vector<8x512xf32> to vector<8x128xf32>
    %265 = arith.negf %264 : vector<8x128xf32>
    %266 = math.exp %265 : vector<8x128xf32>
    %cst_118 = arith.constant 1.000000e+00 : f32
    %267 = vector.broadcast %cst_118 : f32 to vector<8x128xf32>
    %268 = arith.addf %267, %266 : vector<8x128xf32>
    %269 = arith.divf %267, %268 : vector<8x128xf32>
    %270 = vector.extract_strided_slice %257 {offsets = [0, 256], sizes = [8, 128], strides = [1, 1]} : vector<8x512xf32> to vector<8x128xf32>
    %271 = math.tanh %270 : vector<8x128xf32>
    %272 = vector.extract_strided_slice %257 {offsets = [0, 384], sizes = [8, 128], strides = [1, 1]} : vector<8x512xf32> to vector<8x128xf32>
    %273 = arith.negf %272 : vector<8x128xf32>
    %274 = math.exp %273 : vector<8x128xf32>
    %cst_119 = arith.constant 1.000000e+00 : f32
    %275 = vector.broadcast %cst_119 : f32 to vector<8x128xf32>
    %276 = arith.addf %275, %274 : vector<8x128xf32>
    %277 = arith.divf %275, %276 : vector<8x128xf32>
    %278 = arith.mulf %269, %250 : vector<8x128xf32>
    %279 = arith.mulf %263, %271 : vector<8x128xf32>
    %280 = arith.addf %278, %279 : vector<8x128xf32>
    %281 = math.tanh %280 : vector<8x128xf32>
    %282 = arith.mulf %277, %281 : vector<8x128xf32>
    %c0_120 = arith.constant 0 : index
    %c0_121 = arith.constant 0 : index
    %283 = vector.load %arg6[%c0_120, %c0_121] : memref<8x128xf32, #tpu.memory_space<vmem>>, vector<8x128xf32>
    tpu.vector_store %arg6[%c0_120, %c0_121], %280 {strides = array<i32>} : memref<8x128xf32, #tpu.memory_space<vmem>>, vector<8x128xf32>,
    %c0_122 = arith.constant 0 : index
    %c0_123 = arith.constant 0 : index
    %284 = vector.load %arg5[%c0_122, %c0_123] : memref<8x128xf32, #tpu.memory_space<vmem>>, vector<8x128xf32>
    tpu.vector_store %arg5[%c0_122, %c0_123], %282 {strides = array<i32>} : memref<8x128xf32, #tpu.memory_space<vmem>>, vector<8x128xf32>,
    %285 = arith.truncf %282 : vector<8x128xf32> to vector<8x128xbf16>
    %286 = arith.index_cast %c6_i32 : i32 to index
    %c0_124 = arith.constant 0 : index
    %c0_125 = arith.constant 0 : index
    %287 = vector.load %arg4[%286, %c0_124, %c0_125] : memref<8x8x128xbf16, #tpu.memory_space<vmem>>, vector<1x8x128xbf16>
    %288 = vector.shape_cast %287 : vector<1x8x128xbf16> to vector<8x128xbf16>
    %289 = vector.shape_cast %285 : vector<8x128xbf16> to vector<1x8x128xbf16>
    tpu.vector_store %arg4[%286, %c0_124, %c0_125], %289 {strides = array<i32>} : memref<8x8x128xbf16, #tpu.memory_space<vmem>>, vector<1x8x128xbf16>,
    %c7_i32 = arith.constant 7 : i32
    %c0_126 = arith.constant 0 : index
    %c0_127 = arith.constant 0 : index
    %290 = vector.load %arg5[%c0_126, %c0_127] : memref<8x128xf32, #tpu.memory_space<vmem>>, vector<8x128xf32>
    %c0_128 = arith.constant 0 : index
    %c0_129 = arith.constant 0 : index
    %291 = vector.load %arg6[%c0_128, %c0_129] : memref<8x128xf32, #tpu.memory_space<vmem>>, vector<8x128xf32>
    %292 = arith.index_cast %c7_i32 : i32 to index
    %c0_130 = arith.constant 0 : index
    %c0_131 = arith.constant 0 : index
    %293 = vector.load %arg2[%292, %c0_130, %c0_131] : memref<8x8x512xf32, #tpu.memory_space<vmem>>, vector<1x8x512xf32>
    %294 = vector.shape_cast %293 : vector<1x8x512xf32> to vector<8x512xf32>
    %295 = arith.truncf %290 : vector<8x128xf32> to vector<8x128xbf16>
    %c0_132 = arith.constant 0 : index
    %c0_133 = arith.constant 0 : index
    %296 = vector.load %arg3[%c0_132, %c0_133] : memref<128x512xbf16, #tpu.memory_space<vmem>>, vector<128x512xbf16>
    %cst_134 = arith.constant dense<0.000000e+00> : vector<8x512xf32>
    %297 = tpu.matmul %295, %296, %cst_134 {dimension_numbers = #tpu.dot_dimension_numbers<[1], [0], [0], [1], [0, 0, 1, 1], [], []>} : vector<8x128xbf16>, vector<128x512xbf16>, vector<8x512xf32> -> vector<8x512xf32>
    %298 = arith.addf %294, %297 : vector<8x512xf32>
    %299 = vector.extract_strided_slice %298 {offsets = [0, 0], sizes = [8, 128], strides = [1, 1]} : vector<8x512xf32> to vector<8x128xf32>
    %300 = arith.negf %299 : vector<8x128xf32>
    %301 = math.exp %300 : vector<8x128xf32>
    %cst_135 = arith.constant 1.000000e+00 : f32
    %302 = vector.broadcast %cst_135 : f32 to vector<8x128xf32>
    %303 = arith.addf %302, %301 : vector<8x128xf32>
    %304 = arith.divf %302, %303 : vector<8x128xf32>
    %305 = vector.extract_strided_slice %298 {offsets = [0, 128], sizes = [8, 128], strides = [1, 1]} : vector<8x512xf32> to vector<8x128xf32>
    %306 = arith.negf %305 : vector<8x128xf32>
    %307 = math.exp %306 : vector<8x128xf32>
    %cst_136 = arith.constant 1.000000e+00 : f32
    %308 = vector.broadcast %cst_136 : f32 to vector<8x128xf32>
    %309 = arith.addf %308, %307 : vector<8x128xf32>
    %310 = arith.divf %308, %309 : vector<8x128xf32>
    %311 = vector.extract_strided_slice %298 {offsets = [0, 256], sizes = [8, 128], strides = [1, 1]} : vector<8x512xf32> to vector<8x128xf32>
    %312 = math.tanh %311 : vector<8x128xf32>
    %313 = vector.extract_strided_slice %298 {offsets = [0, 384], sizes = [8, 128], strides = [1, 1]} : vector<8x512xf32> to vector<8x128xf32>
    %314 = arith.negf %313 : vector<8x128xf32>
    %315 = math.exp %314 : vector<8x128xf32>
    %cst_137 = arith.constant 1.000000e+00 : f32
    %316 = vector.broadcast %cst_137 : f32 to vector<8x128xf32>
    %317 = arith.addf %316, %315 : vector<8x128xf32>
    %318 = arith.divf %316, %317 : vector<8x128xf32>
    %319 = arith.mulf %310, %291 : vector<8x128xf32>
    %320 = arith.mulf %304, %312 : vector<8x128xf32>
    %321 = arith.addf %319, %320 : vector<8x128xf32>
    %322 = math.tanh %321 : vector<8x128xf32>
    %323 = arith.mulf %318, %322 : vector<8x128xf32>
    %c0_138 = arith.constant 0 : index
    %c0_139 = arith.constant 0 : index
    %324 = vector.load %arg6[%c0_138, %c0_139] : memref<8x128xf32, #tpu.memory_space<vmem>>, vector<8x128xf32>
    tpu.vector_store %arg6[%c0_138, %c0_139], %321 {strides = array<i32>} : memref<8x128xf32, #tpu.memory_space<vmem>>, vector<8x128xf32>,
    %c0_140 = arith.constant 0 : index
    %c0_141 = arith.constant 0 : index
    %325 = vector.load %arg5[%c0_140, %c0_141] : memref<8x128xf32, #tpu.memory_space<vmem>>, vector<8x128xf32>
    tpu.vector_store %arg5[%c0_140, %c0_141], %323 {strides = array<i32>} : memref<8x128xf32, #tpu.memory_space<vmem>>, vector<8x128xf32>,
    %326 = arith.truncf %323 : vector<8x128xf32> to vector<8x128xbf16>
    %327 = arith.index_cast %c7_i32 : i32 to index
    %c0_142 = arith.constant 0 : index
    %c0_143 = arith.constant 0 : index
    %328 = vector.load %arg4[%327, %c0_142, %c0_143] : memref<8x8x128xbf16, #tpu.memory_space<vmem>>, vector<1x8x128xbf16>
    %329 = vector.shape_cast %328 : vector<1x8x128xbf16> to vector<8x128xbf16>
    %330 = vector.shape_cast %326 : vector<8x128xbf16> to vector<1x8x128xbf16>
    tpu.vector_store %arg4[%327, %c0_142, %c0_143], %330 {strides = array<i32>} : memref<8x8x128xbf16, #tpu.memory_space<vmem>>, vector<1x8x128xbf16>,
    %c8_i32 = arith.constant 8 : i32
    return
  }
  func.func @transform_0(%arg0: i32, %arg1: i32) -> (i32, i32, i32) {
    %c0_i32 = arith.constant 0 : i32
    %c0_i32_0 = arith.constant 0 : i32
    return %arg1, %arg0, %c0_i32 : i32, i32, i32
  }
  func.func @transform_1(%arg0: i32, %arg1: i32) -> (i32, i32) {
    %c0_i32 = arith.constant 0 : i32
    %c0_i32_0 = arith.constant 0 : i32
    %c0_i32_1 = arith.constant 0 : i32
    return %c0_i32, %c0_i32_0 : i32, i32
  }
  func.func @transform_2(%arg0: i32, %arg1: i32) -> (i32, i32, i32) {
    %c0_i32 = arith.constant 0 : i32
    %c0_i32_0 = arith.constant 0 : i32
    return %arg1, %arg0, %c0_i32 : i32, i32, i32
  }
}

module attributes {stable_mosaic.version = 11 : i64} {
  func.func @_matmul_bias_kernel(%arg0: i32, %arg1: i32, %arg2: i32, %arg3: memref<64x128xbf16, #tpu.memory_space<vmem>>, %arg4: memref<128x128xbf16, #tpu.memory_space<vmem>>, %arg5: memref<1x128xf32, #tpu.memory_space<vmem>>, %arg6: memref<64x128xf32, #tpu.memory_space<vmem>>) attributes {dimension_semantics = [#tpu.dimension_semantics<parallel>, #tpu.dimension_semantics<parallel>, #tpu.dimension_semantics<arbitrary>], iteration_bounds = array<i64: 1, 1, 1>, scalar_prefetch = 0 : i64, scratch_operands = 0 : i64, tpu.core_type = #tpu.core_type<tc>, window_params = [{transform_indices = @transform_0, window_bounds = array<i64: 64, 128>}, {transform_indices = @transform_1, window_bounds = array<i64: 128, 128>}, {transform_indices = @transform_2, window_bounds = array<i64: 1, 128>}, {transform_indices = @transform_3, window_bounds = array<i64: 64, 128>}]} {
    %c0_i32 = arith.constant 0 : i32
    %0 = arith.cmpi eq, %arg2, %c0_i32 : i32
    %1 = arith.extui %0 : i1 to i32
    %c0_i32_0 = arith.constant 0 : i32
    %2 = arith.cmpi ne, %1, %c0_i32_0 : i32
    scf.if %2 {
      %cst_10 = arith.constant 0.000000e+00 : f32
      %12 = vector.broadcast %cst_10 : f32 to vector<64x128xf32>
      %c0_11 = arith.constant 0 : index
      %c0_12 = arith.constant 0 : index
      %13 = vector.load %arg6[%c0_11, %c0_12] : memref<64x128xf32, #tpu.memory_space<vmem>>, vector<64x128xf32>
      tpu.vector_store %arg6[%c0_11, %c0_12], %12 {strides = array<i32>} : memref<64x128xf32, #tpu.memory_space<vmem>>, vector<64x128xf32>,
    } else {
    }
    %c0 = arith.constant 0 : index
    %c0_1 = arith.constant 0 : index
    %3 = vector.load %arg6[%c0, %c0_1] : memref<64x128xf32, #tpu.memory_space<vmem>>, vector<64x128xf32>
    %c0_2 = arith.constant 0 : index
    %c0_3 = arith.constant 0 : index
    %4 = vector.load %arg3[%c0_2, %c0_3] : memref<64x128xbf16, #tpu.memory_space<vmem>>, vector<64x128xbf16>
    %c0_4 = arith.constant 0 : index
    %c0_5 = arith.constant 0 : index
    %5 = vector.load %arg4[%c0_4, %c0_5] : memref<128x128xbf16, #tpu.memory_space<vmem>>, vector<128x128xbf16>
    %cst = arith.constant dense<0.000000e+00> : vector<64x128xf32>
    %6 = tpu.matmul %4, %5, %cst {dimension_numbers = #tpu.dot_dimension_numbers<[1], [0], [0], [1], [0, 0, 1, 1], [], []>} : vector<64x128xbf16>, vector<128x128xbf16>, vector<64x128xf32> -> vector<64x128xf32>
    %7 = arith.addf %3, %6 : vector<64x128xf32>
    %c0_6 = arith.constant 0 : index
    %c0_7 = arith.constant 0 : index
    %8 = vector.load %arg6[%c0_6, %c0_7] : memref<64x128xf32, #tpu.memory_space<vmem>>, vector<64x128xf32>
    tpu.vector_store %arg6[%c0_6, %c0_7], %7 {strides = array<i32>} : memref<64x128xf32, #tpu.memory_space<vmem>>, vector<64x128xf32>,
    %c0_i32_8 = arith.constant 0 : i32
    %9 = arith.cmpi eq, %arg2, %c0_i32_8 : i32
    %10 = arith.extui %9 : i1 to i32
    %c0_i32_9 = arith.constant 0 : i32
    %11 = arith.cmpi ne, %10, %c0_i32_9 : i32
    scf.if %11 {
      %c0_10 = arith.constant 0 : index
      %c0_11 = arith.constant 0 : index
      %12 = vector.load %arg6[%c0_10, %c0_11] : memref<64x128xf32, #tpu.memory_space<vmem>>, vector<64x128xf32>
      %c0_12 = arith.constant 0 : index
      %c0_13 = arith.constant 0 : index
      %13 = vector.load %arg5[%c0_12, %c0_13] : memref<1x128xf32, #tpu.memory_space<vmem>>, vector<1x128xf32>
      %14 = vector.broadcast %13 : vector<1x128xf32> to vector<64x128xf32>
      %15 = arith.addf %12, %14 : vector<64x128xf32>
      %c0_14 = arith.constant 0 : index
      %c0_15 = arith.constant 0 : index
      %16 = vector.load %arg6[%c0_14, %c0_15] : memref<64x128xf32, #tpu.memory_space<vmem>>, vector<64x128xf32>
      tpu.vector_store %arg6[%c0_14, %c0_15], %15 {strides = array<i32>} : memref<64x128xf32, #tpu.memory_space<vmem>>, vector<64x128xf32>,
    } else {
    }
    return
  }
  func.func @transform_0(%arg0: i32, %arg1: i32, %arg2: i32) -> (i32, i32) {
    %c0_i32 = arith.constant 0 : i32
    return %arg0, %arg2 : i32, i32
  }
  func.func @transform_1(%arg0: i32, %arg1: i32, %arg2: i32) -> (i32, i32) {
    %c0_i32 = arith.constant 0 : i32
    return %arg2, %arg1 : i32, i32
  }
  func.func @transform_2(%arg0: i32, %arg1: i32, %arg2: i32) -> (i32, i32) {
    %c0_i32 = arith.constant 0 : i32
    %c0_i32_0 = arith.constant 0 : i32
    return %c0_i32, %arg1 : i32, i32
  }
  func.func @transform_3(%arg0: i32, %arg1: i32, %arg2: i32) -> (i32, i32) {
    %c0_i32 = arith.constant 0 : i32
    return %arg0, %arg1 : i32, i32
  }
}

</mosaic_0001>

<bundles_post_ra>
// kernel: decoder_rnn_forward.5
= control target key start
LH: loop header
LB: loop body
LE: loop exit
PB: predicated region body
PF: predicated region fallthrough
CT: control target
= control target key end

     0   :  { %s411_s1 = inlined_call_operand.vmem [shape: bf16[128,128], index: 1, kind: input, shape index: {}]   ;;  %s412_s0 = inlined_call_operand.vmem [shape: bf16[64,128], index: 0, kind: input, shape index: {}]   ;;  %s413_s2 = inlined_call_operand.vmem [shape: f32[1,128], index: 2, kind: input, shape index: {}]   ;;  %s414_s3 = inlined_call_operand.vmem [shape: f32[64,128], index: 3, kind: output, shape index: {}]  }
   0x1   :  { %v316_v0 = vld [vmem:[%s411_s1] sm:$0xff]   ;;  %v317_v1 = vld [vmem:[%s411_s1 + $0x8] sm:$0xff]   ;;  %v318_v2 = vld [vmem:[%s411_s1 + $0x10] sm:$0xff]  }
   0x2   :  { %275 = vmatprep.subr.bf16.mxu0 %v316_v0  ;;  %299 = vmatprep.subr.bf16.mxu1 %v316_v0  ;;  %v319_v3 = vld [vmem:[%s411_s1 + $0x18] sm:$0xff]   ;;  %v324_v4 = vld [vmem:[%s412_s0] sm:$0xff]   ;;  %v325_v5 = vld [vmem:[%s412_s0 + $0x10] sm:$0xff]  }
   0x3   :  { %276 = vmatpush3.bf16.msra.mxu0 %v316_v0  ;;  %307 = vmatpush3.bf16.msra.mxu1 %v316_v0  ;;  %v320_v6 = vld [vmem:[%s411_s1 + $0x20] sm:$0xff]   ;;  %v321_v7 = vld [vmem:[%s411_s1 + $0x28] sm:$0xff]   ;;  %v322_v8 = vld [vmem:[%s411_s1 + $0x30] sm:$0xff]  }
   0x4   :  { %277 = vmatprep.subr.bf16.mxu0 %v317_v1  ;;  %300 = vmatprep.subr.bf16.mxu1 %v317_v1  ;;  %v323_v9 = vld [vmem:[%s411_s1 + $0x38] sm:$0xff]   ;;  %v326_v10 = vld [vmem:[%s412_s0 + $0x8] sm:$0xff]   ;;  %v262_v13 = vld [vmem:[%s413_s2] ss:$0 sm:$0xff] }
   0x5   :  { %291 = vmatprep.mubr.bf16.mxu0 %v324_v4  ;;  %295 = vmatprep.mubr.bf16.mxu1 %v325_v5  ;;  %v327_v11 = vld [vmem:[%s412_s0 + $0x18] sm:$0xff]  }
   0x7   :  { %278 = vmatpush3.bf16.msra.mxu0 %v317_v1  ;;  %308 = vmatpush3.bf16.msra.mxu1 %v317_v1 }
   0x8   :  { %279 = vmatprep.subr.bf16.mxu0 %v318_v2  ;;  %301 = vmatprep.subr.bf16.mxu1 %v318_v2 }
   0xb   :  { %280 = vmatpush3.bf16.msra.mxu0 %v318_v2  ;;  %309 = vmatpush3.bf16.msra.mxu1 %v318_v2 }
   0xc   :  { %281 = vmatprep.subr.bf16.mxu0 %v319_v3  ;;  %302 = vmatprep.subr.bf16.mxu1 %v319_v3 }
   0xf   :  { %282 = vmatpush3.bf16.msra.mxu0 %v319_v3  ;;  %310 = vmatpush3.bf16.msra.mxu1 %v319_v3 }
  0x10   :  { %283 = vmatprep.subr.bf16.mxu0 %v320_v6  ;;  %303 = vmatprep.subr.bf16.mxu1 %v320_v6 }
  0x13   :  { %284 = vmatpush3.bf16.msra.mxu0 %v320_v6  ;;  %311 = vmatpush3.bf16.msra.mxu1 %v320_v6 }
  0x14   :  { %285 = vmatprep.subr.bf16.mxu0 %v321_v7  ;;  %304 = vmatprep.subr.bf16.mxu1 %v321_v7 }
  0x17   :  { %286 = vmatpush3.bf16.msra.mxu0 %v321_v7  ;;  %312 = vmatpush3.bf16.msra.mxu1 %v321_v7 }
  0x18   :  { %287 = vmatprep.subr.bf16.mxu0 %v322_v8  ;;  %305 = vmatprep.subr.bf16.mxu1 %v322_v8 }
  0x1b   :  { %288 = vmatpush3.bf16.msra.mxu0 %v322_v8  ;;  %313 = vmatpush3.bf16.msra.mxu1 %v322_v8 }
  0x1c   :  { %289 = vmatprep.subr.bf16.mxu0 %v323_v9  ;;  %306 = vmatprep.subr.bf16.mxu1 %v323_v9 }
  0x1f   :  { %290 = vmatpush3.bf16.msra.mxu0 %v323_v9  ;;  %314 = vmatpush3.bf16.msra.mxu1 %v323_v9 }
  0x22   :  { %292 = vmatmul.mubr.bf16.vlgmr.msra.gmra.mrb[0].mxu0 %v326_v10  ;;  %296 = vmatmul.mubr.bf16.vlgmr.msra.gmra.mrb[0].mxu1 %v327_v11 }
  0xf5   :  { %v293_v12 = vpop.f32.mrb[0].mxu0  ;;  %v297_v14 = vpop.f32.mrb[0].mxu1 }
  0xf6   :  { %v165_v15 = vpop.f32.mrb[1].mxu0  ;;  %v181_v16 = vpop.f32.mrb[1].mxu1  ;;  %v232_v19 = vadd.f32 %v293_v12, %v262_v13  ;;  %v236_v20 = vadd.f32 %v297_v14, %v262_v13 }
  0xf7   :  { %v294_v17 = vpop.f32.mrb[2].mxu0  ;;  %v298_v18 = vpop.f32.mrb[2].mxu1  ;;  %v230_v23 = vadd.f32 %v262_v13, %v165_v15  ;;  %v234_v24 = vadd.f32 %v262_v13, %v181_v16 }
  0xf8   :  { %v168_v21 = vpop.f32.mrb[3].mxu0  ;;  %v184_v22 = vpop.f32.mrb[3].mxu1  ;;  %240 = vst [vmem:[%s414_s3 + $0x10] sm:$0xff] %v232_v19  ;;  %244 = vst [vmem:[%s414_s3 + $0x30] sm:$0xff] %v236_v20  ;;  %v233_v25 = vadd.f32 %v294_v17, %v262_v13  ;;  %v237_v26 = vadd.f32 %v298_v18, %v262_v13 }
  0xf9   :  { %238 = vst [vmem:[%s414_s3] sm:$0xff] %v230_v23  ;;  %242 = vst [vmem:[%s414_s3 + $0x20] sm:$0xff] %v234_v24  ;;  %v231_v27 = vadd.f32 %v262_v13, %v168_v21  ;;  %v235_v28 = vadd.f32 %v262_v13, %v184_v22 }
  0xfa   :  { %241 = vst [vmem:[%s414_s3 + $0x18] sm:$0xff] %v233_v25  ;;  %245 = vst [vmem:[%s414_s3 + $0x38] sm:$0xff] %v237_v26 }
  0xfb   :  { %239 = vst [vmem:[%s414_s3 + $0x8] sm:$0xff] %v231_v27  ;;  %243 = vst [vmem:[%s414_s3 + $0x28] sm:$0xff] %v235_v28 }

// kernel: decoder_rnn_forward.3
= control target key start
LH: loop header
LB: loop body
LE: loop exit
PB: predicated region body
PF: predicated region fallthrough
CT: control target
= control target key end

     0   :  { %v732_v1 = vmov 0   ;;  %v554_v37 = vlaneseq  ;;  %s1008_s1 = inlined_call_operand.vmem [shape: bf16[128,512], index: 1, kind: input, shape index: {}]   ;;  %s1009_s0 = inlined_call_operand.vmem [shape: bf16[64,128], index: 0, kind: input, shape index: {}]   ;;  %s1010_s2 = inlined_call_operand.vmem [shape: f32[1,512], index: 2, kind: input, shape index: {}]   ;;  %s1011_s3 = inlined_call_operand.vmem [shape: f32[64,512], index: 3, kind: output, shape index: {}]  }
   0x1   :  { %v680_v0 = vld [vmem:[%s1008_s1 + $0x4] ss:$16 sps:$4 sm:$0xff]   ;;  %339 = vmatprep.mubr.bf16.mxu0 %v732_v1  ;;  %412 = vmatprep.mubr.bf16.mxu1 %v732_v1  ;;  %v682_v2 = vld [vmem:[%s1008_s1 + $0xc] ss:$16 sps:$4 sm:$0xff]   ;;  %v684_v3 = vld [vmem:[%s1008_s1] ss:$16 sps:$4 sm:$0xff]  }
   0x2   :  { %307 = vmatprep.subr.bf16.mxu0 %v680_v0  ;;  %v685_v4 = vld [vmem:[%s1008_s1 + $0x8] ss:$16 sps:$4 sm:$0xff]   ;;  %380 = vmatprep.subr.bf16.mxu1 %v682_v2  ;;  %v686_v5 = vld [vmem:[%s1008_s1 + $0x24] ss:$16 sps:$4 sm:$0xff]   ;;  %v688_v6 = vld [vmem:[%s1008_s1 + $0x2c] ss:$16 sps:$4 sm:$0xff]  }
   0x3   :  { %308 = vmatpush1.bf16.msra.mxu0 %v684_v3  ;;  %381 = vmatpush1.bf16.msra.mxu1 %v685_v4  ;;  %v690_v7 = vld [vmem:[%s1008_s1 + $0x20] ss:$16 sps:$4 sm:$0xff]   ;;  %v691_v8 = vld [vmem:[%s1008_s1 + $0x28] ss:$16 sps:$4 sm:$0xff]   ;;  %v692_v9 = vld [vmem:[%s1008_s1 + $0x44] ss:$16 sps:$4 sm:$0xff]  }
   0x4   :  { %309 = vmatprep.subr.bf16.mxu0 %v686_v5  ;;  %382 = vmatprep.subr.bf16.mxu1 %v688_v6  ;;  %v694_v10 = vld [vmem:[%s1008_s1 + $0x4c] ss:$16 sps:$4 sm:$0xff]   ;;  %v696_v11 = vld [vmem:[%s1008_s1 + $0x40] ss:$16 sps:$4 sm:$0xff]   ;;  %v697_v12 = vld [vmem:[%s1008_s1 + $0x48] ss:$16 sps:$4 sm:$0xff]  }
   0x5   :  { %v698_v13 = vld [vmem:[%s1008_s1 + $0x64] ss:$16 sps:$4 sm:$0xff]   ;;  %v700_v14 = vld [vmem:[%s1008_s1 + $0x6c] ss:$16 sps:$4 sm:$0xff]   ;;  %v702_v15 = vld [vmem:[%s1008_s1 + $0x60] ss:$16 sps:$4 sm:$0xff]  }
   0x6   :  { %v703_v16 = vld [vmem:[%s1008_s1 + $0x68] ss:$16 sps:$4 sm:$0xff]   ;;  %v704_v17 = vld [vmem:[%s1008_s1 + $0x84] ss:$16 sps:$4 sm:$0xff]   ;;  %v706_v18 = vld [vmem:[%s1008_s1 + $0x8c] ss:$16 sps:$4 sm:$0xff]  }
   0x7   :  { %310 = vmatpush1.bf16.msra.mxu0 %v690_v7  ;;  %383 = vmatpush1.bf16.msra.mxu1 %v691_v8  ;;  %v708_v19 = vld [vmem:[%s1008_s1 + $0x80] ss:$16 sps:$4 sm:$0xff]   ;;  %v709_v20 = vld [vmem:[%s1008_s1 + $0x88] ss:$16 sps:$4 sm:$0xff]   ;;  %v710_v21 = vld [vmem:[%s1008_s1 + $0xa4] ss:$16 sps:$4 sm:$0xff]  }
   0x8   :  { %311 = vmatprep.subr.bf16.mxu0 %v692_v9  ;;  %384 = vmatprep.subr.bf16.mxu1 %v694_v10  ;;  %v712_v22 = vld [vmem:[%s1008_s1 + $0xac] ss:$16 sps:$4 sm:$0xff]   ;;  %v714_v23 = vld [vmem:[%s1008_s1 + $0xa0] ss:$16 sps:$4 sm:$0xff]   ;;  %v715_v24 = vld [vmem:[%s1008_s1 + $0xa8] ss:$16 sps:$4 sm:$0xff]  }
   0x9   :  { %v716_v25 = vld [vmem:[%s1008_s1 + $0xc4] ss:$16 sps:$4 sm:$0xff]   ;;  %v718_v26 = vld [vmem:[%s1008_s1 + $0xcc] ss:$16 sps:$4 sm:$0xff]   ;;  %v720_v27 = vld [vmem:[%s1008_s1 + $0xc0] ss:$16 sps:$4 sm:$0xff]  }
   0xa   :  { %v721_v28 = vld [vmem:[%s1008_s1 + $0xc8] ss:$16 sps:$4 sm:$0xff]   ;;  %v722_v29 = vld [vmem:[%s1008_s1 + $0xe4] ss:$16 sps:$4 sm:$0xff]   ;;  %v724_v30 = vld [vmem:[%s1008_s1 + $0xec] ss:$16 sps:$4 sm:$0xff]  }
   0xb   :  { %312 = vmatpush1.bf16.msra.mxu0 %v696_v11  ;;  %385 = vmatpush1.bf16.msra.mxu1 %v697_v12  ;;  %v726_v31 = vld [vmem:[%s1008_s1 + $0xe0] ss:$16 sps:$4 sm:$0xff]   ;;  %v727_v32 = vld [vmem:[%s1008_s1 + $0xe8] ss:$16 sps:$4 sm:$0xff]   ;;  %v555_v38 = vshrl.u32 %v554_v37, 7 }
   0xc   :  { %313 = vmatprep.subr.bf16.mxu0 %v698_v13  ;;  %386 = vmatprep.subr.bf16.mxu1 %v700_v14  ;;  %v728_v33 = vld [vmem:[%s1009_s0] sm:$0xff]   ;;  %v729_v34 = vld [vmem:[%s1009_s0 + $0x8] sm:$0xff]   ;;  %v730_v35 = vld [vmem:[%s1009_s0 + $0x10] sm:$0xff]  }
   0xd   :  { %v731_v36 = vld [vmem:[%s1009_s0 + $0x18] sm:$0xff]   ;;  %v556_v39 = vsub.s32 0, %v555_v38  ;;  %v564_v40 = vsub.s32 2, %v555_v38  ;;  %v552_v41 = vld [vmem:[%s1010_s2] sm:$0xf]  ;;  %v560_v42 = vsub.s32 1, %v555_v38 }
   0xe   :  { %v568_v43 = vsub.s32 3, %v555_v38 }
   0xf   :  { %314 = vmatpush1.bf16.msra.mxu0 %v702_v15  ;;  %387 = vmatpush1.bf16.msra.mxu1 %v703_v16  ;;  %v872_v44 = vrot.slane %v552_v41, %v556_v39  ;;  %v874_v45 = vrot.slane %v552_v41, %v564_v40  ;;  %v876_v48 = vrot.slane %v552_v41, %v560_v42 }
  0x10   :  { %315 = vmatprep.subr.bf16.mxu0 %v704_v17  ;;  %388 = vmatprep.subr.bf16.mxu1 %v706_v18  ;;  %v878_v49 = vrot.slane %v552_v41, %v568_v43 }
  0x13   :  { %316 = vmatpush1.bf16.msra.mxu0 %v708_v19  ;;  %389 = vmatpush1.bf16.msra.mxu1 %v709_v20 }
  0x14   :  { %317 = vmatprep.subr.bf16.mxu0 %v710_v21  ;;  %390 = vmatprep.subr.bf16.mxu1 %v712_v22 }
  0x17   :  { %318 = vmatpush1.bf16.msra.mxu0 %v714_v23  ;;  %391 = vmatpush1.bf16.msra.mxu1 %v715_v24 }
  0x18   :  { %319 = vmatprep.subr.bf16.mxu0 %v716_v25  ;;  %392 = vmatprep.subr.bf16.mxu1 %v718_v26 }
  0x1b   :  { %320 = vmatpush1.bf16.msra.mxu0 %v720_v27  ;;  %393 = vmatpush1.bf16.msra.mxu1 %v721_v28 }
  0x1c   :  { %321 = vmatprep.subr.bf16.mxu0 %v722_v29  ;;  %394 = vmatprep.subr.bf16.mxu1 %v724_v30 }
  0x1f   :  { %322 = vmatpush1.bf16.msra.mxu0 %v726_v31  ;;  %395 = vmatpush1.bf16.msra.mxu1 %v727_v32 }
  0x22   :  { %340 = vmatmul.mubr.bf16.vlgmr.msra.gmra.mrb[0].mxu0 %v728_v33  ;;  %413 = vmatmul.mubr.bf16.vlgmr.msra.gmra.mrb[0].mxu1 %v728_v33 }
  0x23   :  { %349 = vmatprep.mubr.bf16.mxu0 %v732_v1  ;;  %422 = vmatprep.mubr.bf16.mxu1 %v732_v1 }
  0x2a   :  { %350 = vmatmul.mubr.bf16.gmra.mrb[4].mxu0 %v729_v34  ;;  %423 = vmatmul.mubr.bf16.gmra.mrb[4].mxu1 %v729_v34 }
  0x2b   :  { %359 = vmatprep.mubr.bf16.mxu0 %v732_v1  ;;  %432 = vmatprep.mubr.bf16.mxu1 %v732_v1 }
  0x32   :  { %360 = vmatmul.mubr.bf16.gmra.mrb[8].mxu0 %v730_v35  ;;  %433 = vmatmul.mubr.bf16.gmra.mrb[8].mxu1 %v730_v35 }
  0x33   :  { %369 = vmatprep.mubr.bf16.mxu0 %v732_v1  ;;  %442 = vmatprep.mubr.bf16.mxu1 %v732_v1 }
  0x3a   :  { %370 = vmatmul.mubr.bf16.gmra.mrb[12].mxu0 %v731_v36  ;;  %443 = vmatmul.mubr.bf16.gmra.mrb[12].mxu1 %v731_v36 }
  0xf5   :  { %v341_v46 = vpop.f32.mrb[0].mxu0  ;;  %v414_v47 = vpop.f32.mrb[0].mxu1 }
  0xf6   :  { %v343_v50 = vpop.f32.mrb[1].mxu0  ;;  %v416_v51 = vpop.f32.mrb[1].mxu1  ;;  %v574_v54 = vadd.f32 %v872_v44, %v341_v46  ;;  %v576_v55 = vadd.f32 %v874_v45, %v414_v47 }
  0xf7   :  { %v345_v52 = vpop.f32.mrb[2].mxu0  ;;  %v418_v53 = vpop.f32.mrb[2].mxu1  ;;  %v575_v58 = vadd.f32 %v876_v48, %v343_v50  ;;  %v577_v59 = vadd.f32 %v878_v49, %v416_v51 }
  0xf8   :  { %v347_v56 = vpop.f32.mrb[3].mxu0  ;;  %v420_v57 = vpop.f32.mrb[3].mxu1  ;;  %606 = vst [vmem:[%s1011_s3] sm:$0xff] %v574_v54  ;;  %608 = vst [vmem:[%s1011_s3 + $0x10] sm:$0xff] %v576_v55  ;;  %v578_v60 = vadd.f32 %v872_v44, %v345_v52  ;;  %v580_v61 = vadd.f32 %v874_v45, %v418_v53 }
  0xf9   :  { %607 = vst [vmem:[%s1011_s3 + $0x8] sm:$0xff] %v575_v58  ;;  %609 = vst [vmem:[%s1011_s3 + $0x18] sm:$0xff] %v577_v59  ;;  %v579_v62 = vadd.f32 %v876_v48, %v347_v56  ;;  %v581_v63 = vadd.f32 %v878_v49, %v420_v57 }
  0xfa   :  { %610 = vst [vmem:[%s1011_s3 + $0x20] sm:$0xff] %v578_v60  ;;  %612 = vst [vmem:[%s1011_s3 + $0x30] sm:$0xff] %v580_v61 }
  0xfb   :  { %611 = vst [vmem:[%s1011_s3 + $0x28] sm:$0xff] %v579_v62  ;;  %613 = vst [vmem:[%s1011_s3 + $0x38] sm:$0xff] %v581_v63 }
  0xfd   :  { %v351_v0 = vpop.f32.mrb[4].mxu0  ;;  %v424_v1 = vpop.f32.mrb[4].mxu1 }
  0xfe   :  { %v353_v2 = vpop.f32.mrb[5].mxu0  ;;  %v426_v3 = vpop.f32.mrb[5].mxu1  ;;  %v582_v6 = vadd.f32 %v872_v44, %v351_v0  ;;  %v584_v7 = vadd.f32 %v874_v45, %v424_v1 }
  0xff   :  { %v355_v4 = vpop.f32.mrb[6].mxu0  ;;  %v428_v5 = vpop.f32.mrb[6].mxu1  ;;  %v583_v10 = vadd.f32 %v876_v48, %v353_v2  ;;  %v585_v11 = vadd.f32 %v878_v49, %v426_v3 }
 0x100   :  { %v357_v8 = vpop.f32.mrb[7].mxu0  ;;  %v430_v9 = vpop.f32.mrb[7].mxu1  ;;  %614 = vst [vmem:[%s1011_s3 + $0x40] sm:$0xff] %v582_v6  ;;  %616 = vst [vmem:[%s1011_s3 + $0x50] sm:$0xff] %v584_v7  ;;  %v586_v12 = vadd.f32 %v872_v44, %v355_v4  ;;  %v588_v13 = vadd.f32 %v874_v45, %v428_v5 }
 0x101   :  { %615 = vst [vmem:[%s1011_s3 + $0x48] sm:$0xff] %v583_v10  ;;  %617 = vst [vmem:[%s1011_s3 + $0x58] sm:$0xff] %v585_v11  ;;  %v587_v14 = vadd.f32 %v876_v48, %v357_v8  ;;  %v589_v15 = vadd.f32 %v878_v49, %v430_v9 }
 0x102   :  { %618 = vst [vmem:[%s1011_s3 + $0x60] sm:$0xff] %v586_v12  ;;  %620 = vst [vmem:[%s1011_s3 + $0x70] sm:$0xff] %v588_v13 }
 0x103   :  { %619 = vst [vmem:[%s1011_s3 + $0x68] sm:$0xff] %v587_v14  ;;  %621 = vst [vmem:[%s1011_s3 + $0x78] sm:$0xff] %v589_v15 }
 0x105   :  { %v361_v16 = vpop.f32.mrb[8].mxu0  ;;  %v434_v17 = vpop.f32.mrb[8].mxu1 }
 0x106   :  { %v363_v18 = vpop.f32.mrb[9].mxu0  ;;  %v436_v19 = vpop.f32.mrb[9].mxu1  ;;  %v590_v22 = vadd.f32 %v872_v44, %v361_v16  ;;  %v592_v23 = vadd.f32 %v874_v45, %v434_v17 }
 0x107   :  { %v365_v20 = vpop.f32.mrb[10].mxu0  ;;  %v438_v21 = vpop.f32.mrb[10].mxu1  ;;  %v591_v26 = vadd.f32 %v876_v48, %v363_v18  ;;  %v593_v27 = vadd.f32 %v878_v49, %v436_v19 }
 0x108   :  { %v367_v24 = vpop.f32.mrb[11].mxu0  ;;  %v440_v25 = vpop.f32.mrb[11].mxu1  ;;  %622 = vst [vmem:[%s1011_s3 + $0x80] sm:$0xff] %v590_v22  ;;  %624 = vst [vmem:[%s1011_s3 + $0x90] sm:$0xff] %v592_v23  ;;  %v594_v28 = vadd.f32 %v872_v44, %v365_v20  ;;  %v596_v29 = vadd.f32 %v874_v45, %v438_v21 }
 0x109   :  { %623 = vst [vmem:[%s1011_s3 + $0x88] sm:$0xff] %v591_v26  ;;  %625 = vst [vmem:[%s1011_s3 + $0x98] sm:$0xff] %v593_v27  ;;  %v595_v30 = vadd.f32 %v876_v48, %v367_v24  ;;  %v597_v31 = vadd.f32 %v878_v49, %v440_v25 }
 0x10a   :  { %626 = vst [vmem:[%s1011_s3 + $0xa0] sm:$0xff] %v594_v28  ;;  %628 = vst [vmem:[%s1011_s3 + $0xb0] sm:$0xff] %v596_v29 }
 0x10b   :  { %627 = vst [vmem:[%s1011_s3 + $0xa8] sm:$0xff] %v595_v30  ;;  %629 = vst [vmem:[%s1011_s3 + $0xb8] sm:$0xff] %v597_v31 }
 0x10d   :  { %v371_v32 = vpop.f32.mrb[12].mxu0  ;;  %v444_v33 = vpop.f32.mrb[12].mxu1 }
 0x10e   :  { %v373_v34 = vpop.f32.mrb[13].mxu0  ;;  %v446_v35 = vpop.f32.mrb[13].mxu1  ;;  %v598_v38 = vadd.f32 %v872_v44, %v371_v32  ;;  %v600_v39 = vadd.f32 %v874_v45, %v444_v33 }
 0x10f   :  { %v375_v36 = vpop.f32.mrb[14].mxu0  ;;  %v448_v37 = vpop.f32.mrb[14].mxu1  ;;  %v599_v42 = vadd.f32 %v876_v48, %v373_v34  ;;  %v601_v43 = vadd.f32 %v878_v49, %v446_v35 }
 0x110   :  { %v377_v40 = vpop.f32.mrb[15].mxu0  ;;  %v450_v41 = vpop.f32.mrb[15].mxu1  ;;  %630 = vst [vmem:[%s1011_s3 + $0xc0] sm:$0xff] %v598_v38  ;;  %632 = vst [vmem:[%s1011_s3 + $0xd0] sm:$0xff] %v600_v39  ;;  %v602_v46 = vadd.f32 %v872_v44, %v375_v36  ;;  %v604_v47 = vadd.f32 %v874_v45, %v448_v37 }
 0x111   :  { %631 = vst [vmem:[%s1011_s3 + $0xc8] sm:$0xff] %v599_v42  ;;  %633 = vst [vmem:[%s1011_s3 + $0xd8] sm:$0xff] %v601_v43  ;;  %v603_v50 = vadd.f32 %v876_v48, %v377_v40  ;;  %v605_v51 = vadd.f32 %v878_v49, %v450_v41 }
 0x112   :  { %634 = vst [vmem:[%s1011_s3 + $0xe0] sm:$0xff] %v602_v46  ;;  %636 = vst [vmem:[%s1011_s3 + $0xf0] sm:$0xff] %v604_v47 }
 0x113   :  { %635 = vst [vmem:[%s1011_s3 + $0xe8] sm:$0xff] %v603_v50  ;;  %637 = vst [vmem:[%s1011_s3 + $0xf8] sm:$0xff] %v605_v51 }

// kernel: decoder_rnn_forward.4
= control target key start
LH: loop header
LB: loop body
LE: loop exit
PB: predicated region body
PF: predicated region fallthrough
CT: control target
= control target key end

     0   :  { %v3081_v1 = vmov 0   ;;  %v3082_v33 = vmov 0.0|0.0   ;;  %s3834_s1 = inlined_call_operand.vmem [shape: bf16[128,512], index: 1, kind: input, shape index: {}]   ;;  %s3835_s0 = inlined_call_operand.vmem [shape: f32[8,8,512], index: 0, kind: input, shape index: {}]   ;;  %s3836_s2 = inlined_call_operand.vmem [shape: bf16[8,8,128], index: 2, kind: output, shape index: {}]  }
   0x1   :  { %v3101_v0 = vld [vmem:[%s3834_s1 + $0x4] ss:$16 sps:$4 sm:$0xff]   ;;  %249 = vmatprep.mubr.bf16.mxu0 %v3081_v1  ;;  %290 = vmatprep.mubr.bf16.mxu1 %v3081_v1  ;;  %v3108_v2 = vld [vmem:[%s3834_s1] ss:$16 sps:$4 sm:$0xff]   ;;  %v3131_v6 = vld [vmem:[%s3834_s1 + $0xc] ss:$16 sps:$4 sm:$0xff]  }
   0x2   :  { %217 = vmatprep.subr.bf16.mxu0 %v3101_v0  ;;  %v3114_v3 = vld [vmem:[%s3834_s1 + $0x24] ss:$16 sps:$4 sm:$0xff]   ;;  %v3120_v4 = vld [vmem:[%s3834_s1 + $0x20] ss:$16 sps:$4 sm:$0xff]   ;;  %v3136_v7 = vld [vmem:[%s3834_s1 + $0x8] ss:$16 sps:$4 sm:$0xff]   ;;  %258 = vmatprep.subr.bf16.mxu1 %v3131_v6 }
   0x3   :  { %218 = vmatpush1.bf16.msra.mxu0 %v3108_v2  ;;  %v3126_v5 = vld [vmem:[%s3834_s1 + $0x44] ss:$16 sps:$4 sm:$0xff]   ;;  %v3142_v8 = vld [vmem:[%s3834_s1 + $0x40] ss:$16 sps:$4 sm:$0xff]   ;;  %259 = vmatpush1.bf16.msra.mxu1 %v3136_v7  ;;  %v3155_v10 = vld [vmem:[%s3834_s1 + $0x2c] ss:$16 sps:$4 sm:$0xff]  }
   0x4   :  { %219 = vmatprep.subr.bf16.mxu0 %v3114_v3  ;;  %v3149_v9 = vld [vmem:[%s3834_s1 + $0x64] ss:$16 sps:$4 sm:$0xff]   ;;  %v3160_v11 = vld [vmem:[%s3834_s1 + $0x28] ss:$16 sps:$4 sm:$0xff]   ;;  %260 = vmatprep.subr.bf16.mxu1 %v3155_v10  ;;  %v3167_v12 = vld [vmem:[%s3834_s1 + $0x60] ss:$16 sps:$4 sm:$0xff]  }
   0x5   :  { %v3172_v13 = vld [vmem:[%s3834_s1 + $0x84] ss:$16 sps:$4 sm:$0xff]   ;;  %v3177_v14 = vld [vmem:[%s3834_s1 + $0x4c] ss:$16 sps:$4 sm:$0xff]   ;;  %v3184_v15 = vld [vmem:[%s3834_s1 + $0x48] ss:$16 sps:$4 sm:$0xff]  }
   0x6   :  { %v3190_v16 = vld [vmem:[%s3834_s1 + $0x6c] ss:$16 sps:$4 sm:$0xff]   ;;  %v3196_v17 = vld [vmem:[%s3834_s1 + $0x80] ss:$16 sps:$4 sm:$0xff]   ;;  %v3202_v18 = vld [vmem:[%s3834_s1 + $0xa4] ss:$16 sps:$4 sm:$0xff]  }
   0x7   :  { %220 = vmatpush1.bf16.msra.mxu0 %v3120_v4  ;;  %261 = vmatpush1.bf16.msra.mxu1 %v3160_v11  ;;  %v3208_v19 = vld [vmem:[%s3834_s1 + $0x68] ss:$16 sps:$4 sm:$0xff]   ;;  %v3214_v20 = vld [vmem:[%s3834_s1 + $0x8c] ss:$16 sps:$4 sm:$0xff]   ;;  %v3220_v21 = vld [vmem:[%s3834_s1 + $0xa0] ss:$16 sps:$4 sm:$0xff]  }
   0x8   :  { %221 = vmatprep.subr.bf16.mxu0 %v3126_v5  ;;  %262 = vmatprep.subr.bf16.mxu1 %v3177_v14  ;;  %v3225_v22 = vld [vmem:[%s3834_s1 + $0xc4] ss:$16 sps:$4 sm:$0xff]   ;;  %v3232_v23 = vld [vmem:[%s3834_s1 + $0x88] ss:$16 sps:$4 sm:$0xff]   ;;  %v3237_v24 = vld [vmem:[%s3834_s1 + $0xc0] ss:$16 sps:$4 sm:$0xff]  }
   0x9   :  { %v3243_v25 = vld [vmem:[%s3834_s1 + $0xac] ss:$16 sps:$4 sm:$0xff]   ;;  %v3248_v26 = vld [vmem:[%s3834_s1 + $0xe4] ss:$16 sps:$4 sm:$0xff]   ;;  %v3253_v27 = vld [vmem:[%s3834_s1 + $0xa8] ss:$16 sps:$4 sm:$0xff]  }
   0xa   :  { %v3259_v28 = vld [vmem:[%s3834_s1 + $0xcc] ss:$16 sps:$4 sm:$0xff]   ;;  %v3266_v29 = vld [vmem:[%s3834_s1 + $0xe0] ss:$16 sps:$4 sm:$0xff]   ;;  %v3272_v30 = vld [vmem:[%s3834_s1 + $0xc8] ss:$16 sps:$4 sm:$0xff]  }
   0xb   :  { %222 = vmatpush1.bf16.msra.mxu0 %v3142_v8  ;;  %263 = vmatpush1.bf16.msra.mxu1 %v3184_v15  ;;  %v3278_v31 = vld [vmem:[%s3834_s1 + $0xec] ss:$16 sps:$4 sm:$0xff]   ;;  %v3288_v32 = vld [vmem:[%s3834_s1 + $0xe8] ss:$16 sps:$4 sm:$0xff]   ;;  %v20_v34 = vld [vmem:[%s3835_s0] sm:$0xff] }
   0xc   :  { %223 = vmatprep.subr.bf16.mxu0 %v3149_v9  ;;  %264 = vmatprep.subr.bf16.mxu1 %v3190_v16  ;;  %v21_v35 = vld [vmem:[%s3835_s0 + $0x8] sm:$0xff]  ;;  %v23_v44 = vld [vmem:[%s3835_s0 + $0x18] sm:$0xff]  ;;  %v22_v50 = vld [vmem:[%s3835_s0 + $0x10] sm:$0xff] }
   0xf   :  { %224 = vmatpush1.bf16.msra.mxu0 %v3167_v12  ;;  %265 = vmatpush1.bf16.msra.mxu1 %v3208_v19 }
  0x10   :  { %225 = vmatprep.subr.bf16.mxu0 %v3172_v13  ;;  %266 = vmatprep.subr.bf16.mxu1 %v3214_v20 }
  0x13   :  { %226 = vmatpush1.bf16.msra.mxu0 %v3196_v17  ;;  %267 = vmatpush1.bf16.msra.mxu1 %v3232_v23 }
  0x14   :  { %227 = vmatprep.subr.bf16.mxu0 %v3202_v18  ;;  %268 = vmatprep.subr.bf16.mxu1 %v3243_v25 }
  0x17   :  { %228 = vmatpush1.bf16.msra.mxu0 %v3220_v21  ;;  %269 = vmatpush1.bf16.msra.mxu1 %v3253_v27 }
  0x18   :  { %229 = vmatprep.subr.bf16.mxu0 %v3225_v22  ;;  %270 = vmatprep.subr.bf16.mxu1 %v3259_v28 }
  0x1b   :  { %230 = vmatpush1.bf16.msra.mxu0 %v3237_v24  ;;  %271 = vmatpush1.bf16.msra.mxu1 %v3272_v30 }
  0x1c   :  { %231 = vmatprep.subr.bf16.mxu0 %v3248_v26  ;;  %272 = vmatprep.subr.bf16.mxu1 %v3278_v31 }
  0x1f   :  { %232 = vmatpush1.bf16.msra.mxu0 %v3266_v29  ;;  %273 = vmatpush1.bf16.msra.mxu1 %v3288_v32 }
  0x20   :  { %531 = vmatprep.subr.bf16.mxu0 %v3101_v0  ;;  %572 = vmatprep.subr.bf16.mxu1 %v3131_v6 }
  0x22   :  { %250 = vmatmul.mubr.bf16.vlgmr.msra.gmra.mrb[0].mxu0 %v3082_v33  ;;  %291 = vmatmul.mubr.bf16.vlgmr.msra.gmra.mrb[0].mxu1 %v3082_v33 }
  0x23   :  { %532 = vmatpush1.bf16.msra.mxu0 %v3108_v2  ;;  %563 = vmatprep.mubr.bf16.mxu0 %v3081_v1 }
  0x24   :  { %533 = vmatprep.subr.bf16.mxu0 %v3114_v3  ;;  %573 = vmatpush1.bf16.msra.mxu1 %v3136_v7 }
  0x25   :  { %574 = vmatprep.subr.bf16.mxu1 %v3155_v10  ;;  %604 = vmatprep.mubr.bf16.mxu1 %v3081_v1 }
  0x27   :  { %534 = vmatpush1.bf16.msra.mxu0 %v3120_v4 }
  0x28   :  { %535 = vmatprep.subr.bf16.mxu0 %v3126_v5  ;;  %575 = vmatpush1.bf16.msra.mxu1 %v3160_v11 }
  0x29   :  { %576 = vmatprep.subr.bf16.mxu1 %v3177_v14 }
  0x2b   :  { %536 = vmatpush1.bf16.msra.mxu0 %v3142_v8 }
  0x2c   :  { %537 = vmatprep.subr.bf16.mxu0 %v3149_v9  ;;  %577 = vmatpush1.bf16.msra.mxu1 %v3184_v15 }
  0x2d   :  { %578 = vmatprep.subr.bf16.mxu1 %v3190_v16 }
  0x2f   :  { %538 = vmatpush1.bf16.msra.mxu0 %v3167_v12 }
  0x30   :  { %539 = vmatprep.subr.bf16.mxu0 %v3172_v13  ;;  %579 = vmatpush1.bf16.msra.mxu1 %v3208_v19 }
  0x31   :  { %580 = vmatprep.subr.bf16.mxu1 %v3214_v20 }
  0x33   :  { %540 = vmatpush1.bf16.msra.mxu0 %v3196_v17 }
  0x34   :  { %541 = vmatprep.subr.bf16.mxu0 %v3202_v18  ;;  %581 = vmatpush1.bf16.msra.mxu1 %v3232_v23 }
  0x35   :  { %582 = vmatprep.subr.bf16.mxu1 %v3243_v25 }
  0x37   :  { %542 = vmatpush1.bf16.msra.mxu0 %v3220_v21 }
  0x38   :  { %543 = vmatprep.subr.bf16.mxu0 %v3225_v22  ;;  %583 = vmatpush1.bf16.msra.mxu1 %v3253_v27 }
  0x39   :  { %584 = vmatprep.subr.bf16.mxu1 %v3259_v28 }
  0x3b   :  { %544 = vmatpush1.bf16.msra.mxu0 %v3237_v24 }
  0x3c   :  { %545 = vmatprep.subr.bf16.mxu0 %v3248_v26  ;;  %585 = vmatpush1.bf16.msra.mxu1 %v3272_v30 }
  0x3d   :  { %586 = vmatprep.subr.bf16.mxu1 %v3278_v31 }
  0x3f   :  { %546 = vmatpush1.bf16.msra.mxu0 %v3266_v29 }
  0x40   :  { %846 = vmatprep.subr.bf16.mxu0 %v3101_v0  ;;  %587 = vmatpush1.bf16.msra.mxu1 %v3288_v32 }
  0x41   :  { %887 = vmatprep.subr.bf16.mxu1 %v3131_v6 }
  0xf5   :  { %v251_v36 = vpop.f32.mrb[0].mxu0  ;;  %v292_v45 = vpop.f32.mrb[0].mxu1 }
  0xf6   :  { %v299_v37 = vadd.f32 %v251_v36, %v20_v34  ;;  %v253_v38 = vpop.f32.mrb[1].mxu0  ;;  %v294_v46 = vpop.f32.mrb[1].mxu1  ;;  %v301_v52 = vadd.f32 %v292_v45, %v22_v50  ;;  %v2578_v50 = vld [vmem:[%s3835_s0 + $0x38] sm:$0xff] }
  0xf7   :  { %v300_v39 = vadd.f32 %v253_v38, %v21_v35  ;;  %v255_v40 = vpop.f32.mrb[2].mxu0  ;;  %v302_v47 = vadd.f32 %v294_v46, %v23_v44  ;;  %v296_v48 = vpop.f32.mrb[2].mxu1  ;;  %v2575_v38 = vld [vmem:[%s3835_s0 + $0x20] sm:$0xff] }
  0xf8   :  { %v2572_v41 = vmul.f32 -1.442695, %v299_v37  ;;  %v256_v42 = vpop.f32.mrb[3].mxu0  ;;  %v297_v49 = vpop.f32.mrb[3].mxu1 }
  0xf9   :  { %v2573_v43 = vmul.f32 -1.442695, %v300_v39  ;;  %v2574_v51 = vmul.f32 -1.442695, %v302_v47  ;;  %v2576_v39 = vld [vmem:[%s3835_s0 + $0x28] sm:$0xff] }
  0xfa   :  { %2953 = vpow2.f32 %v2572_v41 }
  0xfb   :  { %2955 = vpow2.f32 %v2573_v43 }
  0xfc   :  { %2957 = vpow2.f32 %v2574_v51 }
  0xfd   :  { %2959 = vtanh.f32 %v301_v52  ;;  %v2577_v52 = vld [vmem:[%s3835_s0 + $0x30] sm:$0xff] }
 0x104   :  { %v2954_v53 = vpop.eup %2953 }
 0x105   :  { %v2956_v54 = vpop.eup %2955  ;;  %v306_v55 = vadd.f32 1.0, %v2954_v53 }
 0x106   :  { %v312_v56 = vadd.f32 1.0, %v2956_v54  ;;  %v2958_v57 = vpop.eup %2957 }
 0x107   :  { %2961 = vrcp.f32 %v306_v55  ;;  %v2960_v58 = vpop.eup %2959  ;;  %v319_v60 = vadd.f32 1.0, %v2958_v57 }
 0x108   :  { %2963 = vrcp.f32 %v312_v56 }
 0x109   :  { %2965 = vrcp.f32 %v319_v60 }
 0x111   :  { %v2962_v59 = vpop.eup %2961 }
 0x112   :  { %v2964_v61 = vpop.eup %2963  ;;  %v323_v62 = vmul.f32 %v2962_v59, %v2960_v58 }
 0x113   :  { %v322_v63 = vmul.f32 0.0, %v2964_v61  ;;  %v2966_v34 = vpop.eup %2965 }
 0x115   :  { %v3340_v33 = vadd.f32 %v323_v62, %v322_v63 }
 0x117   :  { %2967 = vtanh.f32 %v3340_v33 }
 0x121   :  { %v2968_v35 = vpop.eup %2967 }
 0x122   :  { %v326_v36 = vmul.f32 %v2968_v35, %v2966_v34 }
 0x124   :  { %v329_v37 = vpack.c.bf16 %v326_v36, %v326_v36 }
 0x126   :  { %330 = vst [vmem:[%s3836_s2] sm:$0xf] %v329_v37  ;;  %564 = vmatmul.mubr.bf16.vlgmr.msra.gmra.mrb[4].mxu0 %v329_v37  ;;  %605 = vmatmul.mubr.bf16.vlgmr.msra.gmra.mrb[4].mxu1 %v329_v37 }
 0x127   :  { %847 = vmatpush1.bf16.msra.mxu0 %v3108_v2  ;;  %888 = vmatpush1.bf16.msra.mxu1 %v3136_v7 }
 0x128   :  { %848 = vmatprep.subr.bf16.mxu0 %v3114_v3  ;;  %889 = vmatprep.subr.bf16.mxu1 %v3155_v10 }
 0x129   :  { %878 = vmatprep.mubr.bf16.mxu0 %v3081_v1  ;;  %919 = vmatprep.mubr.bf16.mxu1 %v3081_v1 }
 0x12b   :  { %849 = vmatpush1.bf16.msra.mxu0 %v3120_v4  ;;  %890 = vmatpush1.bf16.msra.mxu1 %v3160_v11 }
 0x12c   :  { %850 = vmatprep.subr.bf16.mxu0 %v3126_v5  ;;  %891 = vmatprep.subr.bf16.mxu1 %v3177_v14 }
 0x12f   :  { %851 = vmatpush1.bf16.msra.mxu0 %v3142_v8  ;;  %892 = vmatpush1.bf16.msra.mxu1 %v3184_v15 }
 0x130   :  { %852 = vmatprep.subr.bf16.mxu0 %v3149_v9  ;;  %893 = vmatprep.subr.bf16.mxu1 %v3190_v16 }
 0x133   :  { %853 = vmatpush1.bf16.msra.mxu0 %v3167_v12  ;;  %894 = vmatpush1.bf16.msra.mxu1 %v3208_v19 }
 0x134   :  { %854 = vmatprep.subr.bf16.mxu0 %v3172_v13  ;;  %895 = vmatprep.subr.bf16.mxu1 %v3214_v20 }
 0x137   :  { %855 = vmatpush1.bf16.msra.mxu0 %v3196_v17  ;;  %896 = vmatpush1.bf16.msra.mxu1 %v3232_v23 }
 0x138   :  { %856 = vmatprep.subr.bf16.mxu0 %v3202_v18  ;;  %897 = vmatprep.subr.bf16.mxu1 %v3243_v25 }
 0x13b   :  { %857 = vmatpush1.bf16.msra.mxu0 %v3220_v21  ;;  %898 = vmatpush1.bf16.msra.mxu1 %v3253_v27 }
 0x13c   :  { %858 = vmatprep.subr.bf16.mxu0 %v3225_v22  ;;  %899 = vmatprep.subr.bf16.mxu1 %v3259_v28 }
 0x13f   :  { %859 = vmatpush1.bf16.msra.mxu0 %v3237_v24  ;;  %900 = vmatpush1.bf16.msra.mxu1 %v3272_v30 }
 0x140   :  { %860 = vmatprep.subr.bf16.mxu0 %v3248_v26  ;;  %901 = vmatprep.subr.bf16.mxu1 %v3278_v31 }
 0x143   :  { %861 = vmatpush1.bf16.msra.mxu0 %v3266_v29  ;;  %902 = vmatpush1.bf16.msra.mxu1 %v3288_v32 }
 0x144   :  { %1161 = vmatprep.subr.bf16.mxu0 %v3101_v0  ;;  %1202 = vmatprep.subr.bf16.mxu1 %v3131_v6 }
 0x1f9   :  { %v565_v40 = vpop.f32.mrb[4].mxu0  ;;  %v606_v41 = vpop.f32.mrb[4].mxu1 }
 0x1fa   :  { %v613_v42 = vadd.f32 %v2575_v38, %v565_v40  ;;  %v567_v43 = vpop.f32.mrb[5].mxu0  ;;  %v608_v44 = vpop.f32.mrb[5].mxu1  ;;  %v615_v54 = vadd.f32 %v2577_v52, %v606_v41  ;;  %v3508_v52 = vld [vmem:[%s3834_s1 + $0x4c] ss:$16 sps:$4 sm:$0xff]  }
 0x1fb   :  { %v614_v45 = vadd.f32 %v2576_v39, %v567_v43  ;;  %v569_v46 = vpop.f32.mrb[6].mxu0  ;;  %v610_v47 = vpop.f32.mrb[6].mxu1  ;;  %v616_v51 = vadd.f32 %v2578_v50, %v608_v44  ;;  %v3494_v50 = vld [vmem:[%s3834_s1 + $0x28] ss:$16 sps:$4 sm:$0xff]  }
 0x1fc   :  { %v2611_v48 = vmul.f32 -1.442695, %v613_v42  ;;  %v570_v0 = vpop.f32.mrb[7].mxu0  ;;  %v611_v49 = vpop.f32.mrb[7].mxu1  ;;  %v3460_v46 = vld [vmem:[%s3834_s1 + $0xc] ss:$16 sps:$4 sm:$0xff]  }
 0x1fd   :  { %v2612_v6 = vmul.f32 -1.442695, %v614_v45  ;;  %v2613_v53 = vmul.f32 -1.442695, %v616_v51  ;;  %v3455_v45 = vld [vmem:[%s3834_s1 + $0x4] ss:$16 sps:$4 sm:$0xff]  }
 0x1fe   :  { %2969 = vpow2.f32 %v2611_v48  ;;  %v3465_v47 = vld [vmem:[%s3834_s1] ss:$16 sps:$4 sm:$0xff]   ;;  %v3470_v48 = vld [vmem:[%s3834_s1 + $0x8] ss:$16 sps:$4 sm:$0xff]   ;;  %v3479_v0 = vld [vmem:[%s3834_s1 + $0x24] ss:$16 sps:$4 sm:$0xff]  }
 0x1ff   :  { %2971 = vpow2.f32 %v2612_v6  ;;  %v3484_v49 = vld [vmem:[%s3834_s1 + $0x2c] ss:$16 sps:$4 sm:$0xff]   ;;  %v3489_v6 = vld [vmem:[%s3834_s1 + $0x20] ss:$16 sps:$4 sm:$0xff]   ;;  %v3503_v51 = vld [vmem:[%s3834_s1 + $0x44] ss:$16 sps:$4 sm:$0xff]  }
 0x200   :  { %2973 = vpow2.f32 %v2613_v53  ;;  %v3513_v53 = vld [vmem:[%s3834_s1 + $0x40] ss:$16 sps:$4 sm:$0xff]  }
 0x201   :  { %2975 = vtanh.f32 %v615_v54  ;;  %v3518_v54 = vld [vmem:[%s3834_s1 + $0x48] ss:$16 sps:$4 sm:$0xff]  }
 0x208   :  { %v2970_v55 = vpop.eup %2969 }
 0x209   :  { %v2972_v56 = vpop.eup %2971  ;;  %v620_v57 = vadd.f32 1.0, %v2970_v55  ;;  %v3527_v55 = vld [vmem:[%s3834_s1 + $0x64] ss:$16 sps:$4 sm:$0xff]  }
 0x20a   :  { %v626_v58 = vadd.f32 1.0, %v2972_v56  ;;  %v2974_v59 = vpop.eup %2973  ;;  %v3532_v56 = vld [vmem:[%s3834_s1 + $0x6c] ss:$16 sps:$4 sm:$0xff]  }
 0x20b   :  { %2977 = vrcp.f32 %v620_v57  ;;  %v2976_v60 = vpop.eup %2975  ;;  %v633_v34 = vadd.f32 1.0, %v2974_v59  ;;  %v3537_v57 = vld [vmem:[%s3834_s1 + $0x60] ss:$16 sps:$4 sm:$0xff]  }
 0x20c   :  { %2979 = vrcp.f32 %v626_v58  ;;  %v3542_v58 = vld [vmem:[%s3834_s1 + $0x68] ss:$16 sps:$4 sm:$0xff]   ;;  %v3551_v59 = vld [vmem:[%s3834_s1 + $0x80] ss:$16 sps:$4 sm:$0xff]  }
 0x20d   :  { %2981 = vrcp.f32 %v633_v34  ;;  %v3577_v34 = vld [vmem:[%s3834_s1 + $0xac] ss:$16 sps:$4 sm:$0xff]  }
 0x215   :  { %v2978_v61 = vpop.eup %2977 }
 0x216   :  { %v2980_v62 = vpop.eup %2979  ;;  %v637_v63 = vmul.f32 %v2978_v61, %v2976_v60  ;;  %v3556_v60 = vld [vmem:[%s3834_s1 + $0x84] ss:$16 sps:$4 sm:$0xff]   ;;  %v3561_v61 = vld [vmem:[%s3834_s1 + $0x88] ss:$16 sps:$4 sm:$0xff]  }
 0x217   :  { %v636_v35 = vmul.f32 %v2980_v62, %v3340_v33  ;;  %v2982_v37 = vpop.eup %2981  ;;  %v3566_v62 = vld [vmem:[%s3834_s1 + $0x8c] ss:$16 sps:$4 sm:$0xff]  }
 0x219   :  { %v3393_v36 = vadd.f32 %v637_v63, %v636_v35  ;;  %v3571_v63 = vld [vmem:[%s3834_s1 + $0xa4] ss:$16 sps:$4 sm:$0xff]   ;;  %v3584_v35 = vld [vmem:[%s3834_s1 + $0xa0] ss:$16 sps:$4 sm:$0xff]  }
 0x21b   :  { %2983 = vtanh.f32 %v3393_v36 }
 0x225   :  { %v2984_v38 = vpop.eup %2983 }
 0x226   :  { %v640_v39 = vmul.f32 %v2984_v38, %v2982_v37  ;;  %v3596_v37 = vld [vmem:[%s3834_s1 + $0xc4] ss:$16 sps:$4 sm:$0xff]   ;;  %v3602_v38 = vld [vmem:[%s3834_s1 + $0xcc] ss:$16 sps:$4 sm:$0xff]  }
 0x228   :  { %v643_v40 = vpack.c.bf16 %v640_v39, %v640_v39  ;;  %v3608_v39 = vld [vmem:[%s3834_s1 + $0xc0] ss:$16 sps:$4 sm:$0xff]  }
 0x22a   :  { %2614 = vst [vmem:[%s3836_s2 + $0x4] sm:$0xf] %v643_v40  ;;  %879 = vmatmul.mubr.bf16.vlgmr.msra.gmra.mrb[8].mxu0 %v643_v40  ;;  %920 = vmatmul.mubr.bf16.vlgmr.msra.gmra.mrb[8].mxu1 %v643_v40  ;;  %v3615_v40 = vld [vmem:[%s3834_s1 + $0xc8] ss:$16 sps:$4 sm:$0xff]  }
 0x22b   :  { %1162 = vmatpush1.bf16.msra.mxu0 %v3108_v2  ;;  %1203 = vmatpush1.bf16.msra.mxu1 %v3136_v7  ;;  %v2615_v2 = vld [vmem:[%s3835_s0 + $0x40] sm:$0xff] }
 0x22c   :  { %1163 = vmatprep.subr.bf16.mxu0 %v3114_v3  ;;  %1204 = vmatprep.subr.bf16.mxu1 %v3155_v10  ;;  %v2616_v3 = vld [vmem:[%s3835_s0 + $0x48] sm:$0xff] }
 0x22d   :  { %1193 = vmatprep.mubr.bf16.mxu0 %v3081_v1  ;;  %1234 = vmatprep.mubr.bf16.mxu1 %v3081_v1 }
 0x22f   :  { %1164 = vmatpush1.bf16.msra.mxu0 %v3120_v4  ;;  %1205 = vmatpush1.bf16.msra.mxu1 %v3160_v11 }
 0x230   :  { %1165 = vmatprep.subr.bf16.mxu0 %v3126_v5  ;;  %1206 = vmatprep.subr.bf16.mxu1 %v3177_v14 }
 0x233   :  { %1166 = vmatpush1.bf16.msra.mxu0 %v3142_v8  ;;  %1207 = vmatpush1.bf16.msra.mxu1 %v3184_v15 }
 0x234   :  { %1167 = vmatprep.subr.bf16.mxu0 %v3149_v9  ;;  %1208 = vmatprep.subr.bf16.mxu1 %v3190_v16 }
 0x237   :  { %1168 = vmatpush1.bf16.msra.mxu0 %v3167_v12  ;;  %1209 = vmatpush1.bf16.msra.mxu1 %v3208_v19  ;;  %v2617_v19 = vld [vmem:[%s3835_s0 + $0x50] sm:$0xff] }
 0x238   :  { %1169 = vmatprep.subr.bf16.mxu0 %v3172_v13  ;;  %1210 = vmatprep.subr.bf16.mxu1 %v3214_v20 }
 0x23b   :  { %1170 = vmatpush1.bf16.msra.mxu0 %v3196_v17  ;;  %1211 = vmatpush1.bf16.msra.mxu1 %v3232_v23  ;;  %v2618_v17 = vld [vmem:[%s3835_s0 + $0x58] sm:$0xff] }
 0x23c   :  { %1171 = vmatprep.subr.bf16.mxu0 %v3202_v18  ;;  %1212 = vmatprep.subr.bf16.mxu1 %v3243_v25 }
 0x23f   :  { %1172 = vmatpush1.bf16.msra.mxu0 %v3220_v21  ;;  %1213 = vmatpush1.bf16.msra.mxu1 %v3253_v27 }
 0x240   :  { %1173 = vmatprep.subr.bf16.mxu0 %v3225_v22  ;;  %1214 = vmatprep.subr.bf16.mxu1 %v3259_v28 }
 0x243   :  { %1174 = vmatpush1.bf16.msra.mxu0 %v3237_v24  ;;  %1215 = vmatpush1.bf16.msra.mxu1 %v3272_v30 }
 0x244   :  { %1175 = vmatprep.subr.bf16.mxu0 %v3248_v26  ;;  %1216 = vmatprep.subr.bf16.mxu1 %v3278_v31 }
 0x247   :  { %1176 = vmatpush1.bf16.msra.mxu0 %v3266_v29  ;;  %1217 = vmatpush1.bf16.msra.mxu1 %v3288_v32 }
 0x248   :  { %1476 = vmatprep.subr.bf16.mxu0 %v3455_v45  ;;  %1517 = vmatprep.subr.bf16.mxu1 %v3460_v46 }
 0x2fd   :  { %v880_v4 = vpop.f32.mrb[8].mxu0  ;;  %v921_v5 = vpop.f32.mrb[8].mxu1 }
 0x2fe   :  { %v928_v7 = vadd.f32 %v2615_v2, %v880_v4  ;;  %v882_v8 = vpop.f32.mrb[9].mxu0  ;;  %v923_v9 = vpop.f32.mrb[9].mxu1  ;;  %v930_v21 = vadd.f32 %v2617_v19, %v921_v5  ;;  %v3620_v2 = vld [vmem:[%s3834_s1 + $0xe4] ss:$16 sps:$4 sm:$0xff]   ;;  %v3632_v4 = vld [vmem:[%s3834_s1 + $0xe0] ss:$16 sps:$4 sm:$0xff]  }
 0x2ff   :  { %v929_v10 = vadd.f32 %v2616_v3, %v882_v8  ;;  %v884_v11 = vpop.f32.mrb[10].mxu0  ;;  %v925_v12 = vpop.f32.mrb[10].mxu1  ;;  %v931_v18 = vadd.f32 %v2618_v17, %v923_v9  ;;  %v3626_v3 = vld [vmem:[%s3834_s1 + $0xec] ss:$16 sps:$4 sm:$0xff]   ;;  %v3639_v5 = vld [vmem:[%s3834_s1 + $0xe8] ss:$16 sps:$4 sm:$0xff]  }
 0x300   :  { %v2651_v13 = vmul.f32 -1.442695, %v928_v7  ;;  %v885_v14 = vpop.f32.mrb[11].mxu0  ;;  %v926_v15 = vpop.f32.mrb[11].mxu1  ;;  %v2655_v7 = vld [vmem:[%s3835_s0 + $0x60] sm:$0xff]  ;;  %v2656_v8 = vld [vmem:[%s3835_s0 + $0x68] sm:$0xff] }
 0x301   :  { %v2652_v16 = vmul.f32 -1.442695, %v929_v10  ;;  %v2653_v20 = vmul.f32 -1.442695, %v931_v18 }
 0x302   :  { %2985 = vpow2.f32 %v2651_v13 }
 0x303   :  { %2987 = vpow2.f32 %v2652_v16 }
 0x304   :  { %2989 = vpow2.f32 %v2653_v20 }
 0x305   :  { %2991 = vtanh.f32 %v930_v21  ;;  %v2658_v21 = vld [vmem:[%s3835_s0 + $0x78] sm:$0xff] }
 0x30c   :  { %v2986_v22 = vpop.eup %2985 }
 0x30d   :  { %v2988_v23 = vpop.eup %2987  ;;  %v935_v24 = vadd.f32 1.0, %v2986_v22 }
 0x30e   :  { %v941_v25 = vadd.f32 1.0, %v2988_v23  ;;  %v2990_v26 = vpop.eup %2989  ;;  %v2657_v23 = vld [vmem:[%s3835_s0 + $0x70] sm:$0xff] }
 0x30f   :  { %2993 = vrcp.f32 %v935_v24  ;;  %v2992_v27 = vpop.eup %2991  ;;  %v948_v31 = vadd.f32 1.0, %v2990_v26 }
 0x310   :  { %2995 = vrcp.f32 %v941_v25 }
 0x311   :  { %2997 = vrcp.f32 %v948_v31 }
 0x319   :  { %v2994_v28 = vpop.eup %2993 }
 0x31a   :  { %v2996_v29 = vpop.eup %2995  ;;  %v952_v30 = vmul.f32 %v2994_v28, %v2992_v27 }
 0x31b   :  { %v951_v32 = vmul.f32 %v2996_v29, %v3393_v36  ;;  %v2998_v41 = vpop.eup %2997  ;;  %v3591_v36 = vld [vmem:[%s3834_s1 + $0xa8] ss:$16 sps:$4 sm:$0xff]  }
 0x31d   :  { %v3444_v33 = vadd.f32 %v952_v30, %v951_v32 }
 0x31f   :  { %2999 = vtanh.f32 %v3444_v33 }
 0x329   :  { %v3000_v42 = vpop.eup %2999 }
 0x32a   :  { %v955_v43 = vmul.f32 %v3000_v42, %v2998_v41 }
 0x32c   :  { %v958_v44 = vpack.c.bf16 %v955_v43, %v955_v43 }
 0x32e   :  { %2654 = vst [vmem:[%s3836_s2 + $0x8] sm:$0xf] %v958_v44  ;;  %1194 = vmatmul.mubr.bf16.vlgmr.msra.gmra.mrb[12].mxu0 %v958_v44  ;;  %1235 = vmatmul.mubr.bf16.vlgmr.msra.gmra.mrb[12].mxu1 %v958_v44 }
 0x32f   :  { %1508 = vmatprep.mubr.bf16.mxu0 %v3081_v1  ;;  %1549 = vmatprep.mubr.bf16.mxu1 %v3081_v1 }
 0x330   :  { %1477 = vmatpush1.bf16.msra.mxu0 %v3465_v47  ;;  %1518 = vmatpush1.bf16.msra.mxu1 %v3470_v48 }
 0x331   :  { %1478 = vmatprep.subr.bf16.mxu0 %v3479_v0  ;;  %1519 = vmatprep.subr.bf16.mxu1 %v3484_v49 }
 0x334   :  { %1479 = vmatpush1.bf16.msra.mxu0 %v3489_v6  ;;  %1520 = vmatpush1.bf16.msra.mxu1 %v3494_v50 }
 0x335   :  { %1480 = vmatprep.subr.bf16.mxu0 %v3503_v51  ;;  %1521 = vmatprep.subr.bf16.mxu1 %v3508_v52 }
 0x338   :  { %1481 = vmatpush1.bf16.msra.mxu0 %v3513_v53  ;;  %1522 = vmatpush1.bf16.msra.mxu1 %v3518_v54 }
 0x339   :  { %1482 = vmatprep.subr.bf16.mxu0 %v3527_v55  ;;  %1523 = vmatprep.subr.bf16.mxu1 %v3532_v56 }
 0x33c   :  { %1483 = vmatpush1.bf16.msra.mxu0 %v3537_v57  ;;  %1524 = vmatpush1.bf16.msra.mxu1 %v3542_v58 }
 0x33d   :  { %1484 = vmatprep.subr.bf16.mxu0 %v3556_v60  ;;  %1525 = vmatprep.subr.bf16.mxu1 %v3566_v62 }
 0x340   :  { %1485 = vmatpush1.bf16.msra.mxu0 %v3551_v59  ;;  %1526 = vmatpush1.bf16.msra.mxu1 %v3561_v61 }
 0x341   :  { %1486 = vmatprep.subr.bf16.mxu0 %v3571_v63  ;;  %1527 = vmatprep.subr.bf16.mxu1 %v3577_v34 }
 0x344   :  { %1487 = vmatpush1.bf16.msra.mxu0 %v3584_v35  ;;  %1528 = vmatpush1.bf16.msra.mxu1 %v3591_v36 }
 0x345   :  { %1488 = vmatprep.subr.bf16.mxu0 %v3596_v37  ;;  %1529 = vmatprep.subr.bf16.mxu1 %v3602_v38 }
 0x348   :  { %1489 = vmatpush1.bf16.msra.mxu0 %v3608_v39  ;;  %1530 = vmatpush1.bf16.msra.mxu1 %v3615_v40 }
 0x349   :  { %1490 = vmatprep.subr.bf16.mxu0 %v3620_v2  ;;  %1531 = vmatprep.subr.bf16.mxu1 %v3626_v3 }
 0x34c   :  { %1491 = vmatpush1.bf16.msra.mxu0 %v3632_v4  ;;  %1532 = vmatpush1.bf16.msra.mxu1 %v3639_v5 }
 0x34d   :  { %1791 = vmatprep.subr.bf16.mxu0 %v3455_v45  ;;  %1832 = vmatprep.subr.bf16.mxu1 %v3460_v46 }
 0x401   :  { %v1195_v9 = vpop.f32.mrb[12].mxu0  ;;  %v1236_v10 = vpop.f32.mrb[12].mxu1 }
 0x402   :  { %v1243_v11 = vadd.f32 %v2655_v7, %v1195_v9  ;;  %v1197_v12 = vpop.f32.mrb[13].mxu0  ;;  %v1238_v13 = vpop.f32.mrb[13].mxu1  ;;  %v1245_v25 = vadd.f32 %v2657_v23, %v1236_v10 }
 0x403   :  { %v1244_v14 = vadd.f32 %v2656_v8, %v1197_v12  ;;  %v1199_v15 = vpop.f32.mrb[14].mxu0  ;;  %v1240_v16 = vpop.f32.mrb[14].mxu1  ;;  %v1246_v22 = vadd.f32 %v2658_v21, %v1238_v13  ;;  %v2696_v12 = vld [vmem:[%s3835_s0 + $0x88] sm:$0xff] }
 0x404   :  { %v2691_v17 = vmul.f32 -1.442695, %v1243_v11  ;;  %v1200_v18 = vpop.f32.mrb[15].mxu0  ;;  %v1241_v19 = vpop.f32.mrb[15].mxu1 }
 0x405   :  { %v2692_v20 = vmul.f32 -1.442695, %v1244_v14  ;;  %v2693_v24 = vmul.f32 -1.442695, %v1246_v22 }
 0x406   :  { %3001 = vpow2.f32 %v2691_v17 }
 0x407   :  { %3003 = vpow2.f32 %v2692_v20 }
 0x408   :  { %3005 = vpow2.f32 %v2693_v24 }
 0x409   :  { %3007 = vtanh.f32 %v1245_v25  ;;  %v2698_v25 = vld [vmem:[%s3835_s0 + $0x98] sm:$0xff] }
 0x410   :  { %v3002_v26 = vpop.eup %3001 }
 0x411   :  { %v3004_v27 = vpop.eup %3003  ;;  %v1250_v28 = vadd.f32 1.0, %v3002_v26 }
 0x412   :  { %v1256_v29 = vadd.f32 1.0, %v3004_v27  ;;  %v3006_v30 = vpop.eup %3005  ;;  %v2697_v27 = vld [vmem:[%s3835_s0 + $0x90] sm:$0xff] }
 0x413   :  { %3009 = vrcp.f32 %v1250_v28  ;;  %v3008_v31 = vpop.eup %3007  ;;  %v1263_v43 = vadd.f32 1.0, %v3006_v30 }
 0x414   :  { %3011 = vrcp.f32 %v1256_v29 }
 0x415   :  { %3013 = vrcp.f32 %v1263_v43 }
 0x41d   :  { %v3010_v32 = vpop.eup %3009 }
 0x41e   :  { %v3012_v41 = vpop.eup %3011  ;;  %v1267_v42 = vmul.f32 %v3010_v32, %v3008_v31 }
 0x41f   :  { %v1266_v44 = vmul.f32 %v3012_v41, %v3444_v33  ;;  %v3014_v8 = vpop.eup %3013  ;;  %v2695_v33 = vld [vmem:[%s3835_s0 + $0x80] sm:$0xff] }
 0x421   :  { %v3659_v7 = vadd.f32 %v1267_v42, %v1266_v44 }
 0x423   :  { %3015 = vtanh.f32 %v3659_v7 }
 0x42d   :  { %v3016_v9 = vpop.eup %3015 }
 0x42e   :  { %v1270_v10 = vmul.f32 %v3016_v9, %v3014_v8 }
 0x430   :  { %v1273_v11 = vpack.c.bf16 %v1270_v10, %v1270_v10 }
 0x432   :  { %2694 = vst [vmem:[%s3836_s2 + $0xc] sm:$0xf] %v1273_v11  ;;  %1509 = vmatmul.mubr.bf16.vlgmr.msra.gmra.mrb[16].mxu0 %v1273_v11  ;;  %1550 = vmatmul.mubr.bf16.vlgmr.msra.gmra.mrb[16].mxu1 %v1273_v11 }
 0x433   :  { %1792 = vmatpush1.bf16.msra.mxu0 %v3465_v47  ;;  %1833 = vmatpush1.bf16.msra.mxu1 %v3470_v48 }
 0x434   :  { %1793 = vmatprep.subr.bf16.mxu0 %v3479_v0  ;;  %1834 = vmatprep.subr.bf16.mxu1 %v3484_v49 }
 0x435   :  { %1823 = vmatprep.mubr.bf16.mxu0 %v3081_v1  ;;  %1864 = vmatprep.mubr.bf16.mxu1 %v3081_v1 }
 0x437   :  { %1794 = vmatpush1.bf16.msra.mxu0 %v3489_v6  ;;  %1835 = vmatpush1.bf16.msra.mxu1 %v3494_v50 }
 0x438   :  { %1795 = vmatprep.subr.bf16.mxu0 %v3503_v51  ;;  %1836 = vmatprep.subr.bf16.mxu1 %v3508_v52 }
 0x43b   :  { %1796 = vmatpush1.bf16.msra.mxu0 %v3513_v53  ;;  %1837 = vmatpush1.bf16.msra.mxu1 %v3518_v54 }
 0x43c   :  { %1797 = vmatprep.subr.bf16.mxu0 %v3527_v55  ;;  %1838 = vmatprep.subr.bf16.mxu1 %v3532_v56 }
 0x43f   :  { %1798 = vmatpush1.bf16.msra.mxu0 %v3537_v57  ;;  %1839 = vmatpush1.bf16.msra.mxu1 %v3542_v58 }
 0x440   :  { %1799 = vmatprep.subr.bf16.mxu0 %v3556_v60  ;;  %1840 = vmatprep.subr.bf16.mxu1 %v3566_v62 }
 0x443   :  { %1800 = vmatpush1.bf16.msra.mxu0 %v3551_v59  ;;  %1841 = vmatpush1.bf16.msra.mxu1 %v3561_v61 }
 0x444   :  { %1801 = vmatprep.subr.bf16.mxu0 %v3571_v63  ;;  %1842 = vmatprep.subr.bf16.mxu1 %v3577_v34 }
 0x447   :  { %1802 = vmatpush1.bf16.msra.mxu0 %v3584_v35  ;;  %1843 = vmatpush1.bf16.msra.mxu1 %v3591_v36 }
 0x448   :  { %1803 = vmatprep.subr.bf16.mxu0 %v3596_v37  ;;  %1844 = vmatprep.subr.bf16.mxu1 %v3602_v38 }
 0x44b   :  { %1804 = vmatpush1.bf16.msra.mxu0 %v3608_v39  ;;  %1845 = vmatpush1.bf16.msra.mxu1 %v3615_v40 }
 0x44c   :  { %1805 = vmatprep.subr.bf16.mxu0 %v3620_v2  ;;  %1846 = vmatprep.subr.bf16.mxu1 %v3626_v3 }
 0x44f   :  { %1806 = vmatpush1.bf16.msra.mxu0 %v3632_v4  ;;  %1847 = vmatpush1.bf16.msra.mxu1 %v3639_v5 }
 0x450   :  { %2106 = vmatprep.subr.bf16.mxu0 %v3455_v45  ;;  %2147 = vmatprep.subr.bf16.mxu1 %v3460_v46 }
 0x505   :  { %v1510_v13 = vpop.f32.mrb[16].mxu0  ;;  %v1551_v14 = vpop.f32.mrb[16].mxu1 }
 0x506   :  { %v1558_v15 = vadd.f32 %v2695_v33, %v1510_v13  ;;  %v1512_v16 = vpop.f32.mrb[17].mxu0  ;;  %v1553_v17 = vpop.f32.mrb[17].mxu1  ;;  %v1560_v29 = vadd.f32 %v2697_v27, %v1551_v14  ;;  %v2738_v27 = vld [vmem:[%s3835_s0 + $0xb8] sm:$0xff] }
 0x507   :  { %v1559_v18 = vadd.f32 %v2696_v12, %v1512_v16  ;;  %v1514_v19 = vpop.f32.mrb[18].mxu0  ;;  %v1555_v20 = vpop.f32.mrb[18].mxu1  ;;  %v1561_v26 = vadd.f32 %v2698_v25, %v1553_v17  ;;  %v2736_v16 = vld [vmem:[%s3835_s0 + $0xa8] sm:$0xff] }
 0x508   :  { %v2731_v21 = vmul.f32 -1.442695, %v1558_v15  ;;  %v1515_v22 = vpop.f32.mrb[19].mxu0  ;;  %v1556_v23 = vpop.f32.mrb[19].mxu1 }
 0x509   :  { %v2732_v24 = vmul.f32 -1.442695, %v1559_v18  ;;  %v2733_v28 = vmul.f32 -1.442695, %v1561_v26 }
 0x50a   :  { %3017 = vpow2.f32 %v2731_v21 }
 0x50b   :  { %3019 = vpow2.f32 %v2732_v24 }
 0x50c   :  { %3021 = vpow2.f32 %v2733_v28 }
 0x50d   :  { %3023 = vtanh.f32 %v1560_v29  ;;  %v2737_v29 = vld [vmem:[%s3835_s0 + $0xb0] sm:$0xff] }
 0x514   :  { %v3018_v30 = vpop.eup %3017 }
 0x515   :  { %v3020_v31 = vpop.eup %3019  ;;  %v1565_v32 = vadd.f32 1.0, %v3018_v30 }
 0x516   :  { %v1571_v41 = vadd.f32 1.0, %v3020_v31  ;;  %v3022_v42 = vpop.eup %3021 }
 0x517   :  { %3025 = vrcp.f32 %v1565_v32  ;;  %v3024_v43 = vpop.eup %3023  ;;  %v1578_v10 = vadd.f32 1.0, %v3022_v42 }
 0x518   :  { %3027 = vrcp.f32 %v1571_v41 }
 0x519   :  { %3029 = vrcp.f32 %v1578_v10 }
 0x521   :  { %v3026_v44 = vpop.eup %3025 }
 0x522   :  { %v3028_v8 = vpop.eup %3027  ;;  %v1582_v9 = vmul.f32 %v3026_v44, %v3024_v43 }
 0x523   :  { %v1581_v11 = vmul.f32 %v3028_v8, %v3659_v7  ;;  %v3030_v12 = vpop.eup %3029  ;;  %v2735_v7 = vld [vmem:[%s3835_s0 + $0xa0] sm:$0xff] }
 0x525   :  { %v3712_v33 = vadd.f32 %v1582_v9, %v1581_v11 }
 0x527   :  { %3031 = vtanh.f32 %v3712_v33 }
 0x531   :  { %v3032_v13 = vpop.eup %3031 }
 0x532   :  { %v1585_v14 = vmul.f32 %v3032_v13, %v3030_v12 }
 0x534   :  { %v1588_v15 = vpack.c.bf16 %v1585_v14, %v1585_v14 }
 0x536   :  { %2734 = vst [vmem:[%s3836_s2 + $0x10] sm:$0xf] %v1588_v15  ;;  %1824 = vmatmul.mubr.bf16.vlgmr.msra.gmra.mrb[20].mxu0 %v1588_v15  ;;  %1865 = vmatmul.mubr.bf16.vlgmr.msra.gmra.mrb[20].mxu1 %v1588_v15 }
 0x537   :  { %2107 = vmatpush1.bf16.msra.mxu0 %v3465_v47  ;;  %2148 = vmatpush1.bf16.msra.mxu1 %v3470_v48 }
 0x538   :  { %2108 = vmatprep.subr.bf16.mxu0 %v3479_v0  ;;  %2149 = vmatprep.subr.bf16.mxu1 %v3484_v49 }
 0x539   :  { %2138 = vmatprep.mubr.bf16.mxu0 %v3081_v1  ;;  %2179 = vmatprep.mubr.bf16.mxu1 %v3081_v1 }
 0x53b   :  { %2109 = vmatpush1.bf16.msra.mxu0 %v3489_v6  ;;  %2150 = vmatpush1.bf16.msra.mxu1 %v3494_v50 }
 0x53c   :  { %2110 = vmatprep.subr.bf16.mxu0 %v3503_v51  ;;  %2151 = vmatprep.subr.bf16.mxu1 %v3508_v52 }
 0x53f   :  { %2111 = vmatpush1.bf16.msra.mxu0 %v3513_v53  ;;  %2152 = vmatpush1.bf16.msra.mxu1 %v3518_v54 }
 0x540   :  { %2112 = vmatprep.subr.bf16.mxu0 %v3527_v55  ;;  %2153 = vmatprep.subr.bf16.mxu1 %v3532_v56 }
 0x543   :  { %2113 = vmatpush1.bf16.msra.mxu0 %v3537_v57  ;;  %2154 = vmatpush1.bf16.msra.mxu1 %v3542_v58 }
 0x544   :  { %2114 = vmatprep.subr.bf16.mxu0 %v3556_v60  ;;  %2155 = vmatprep.subr.bf16.mxu1 %v3566_v62 }
 0x547   :  { %2115 = vmatpush1.bf16.msra.mxu0 %v3551_v59  ;;  %2156 = vmatpush1.bf16.msra.mxu1 %v3561_v61 }
 0x548   :  { %2116 = vmatprep.subr.bf16.mxu0 %v3571_v63  ;;  %2157 = vmatprep.subr.bf16.mxu1 %v3577_v34 }
 0x54b   :  { %2117 = vmatpush1.bf16.msra.mxu0 %v3584_v35  ;;  %2158 = vmatpush1.bf16.msra.mxu1 %v3591_v36 }
 0x54c   :  { %2118 = vmatprep.subr.bf16.mxu0 %v3596_v37  ;;  %2159 = vmatprep.subr.bf16.mxu1 %v3602_v38 }
 0x54f   :  { %2119 = vmatpush1.bf16.msra.mxu0 %v3608_v39  ;;  %2160 = vmatpush1.bf16.msra.mxu1 %v3615_v40 }
 0x550   :  { %2120 = vmatprep.subr.bf16.mxu0 %v3620_v2  ;;  %2161 = vmatprep.subr.bf16.mxu1 %v3626_v3 }
 0x553   :  { %2121 = vmatpush1.bf16.msra.mxu0 %v3632_v4  ;;  %2162 = vmatpush1.bf16.msra.mxu1 %v3639_v5 }
 0x554   :  { %2421 = vmatprep.subr.bf16.mxu0 %v3455_v45  ;;  %2462 = vmatprep.subr.bf16.mxu1 %v3460_v46 }
 0x609   :  { %v1825_v17 = vpop.f32.mrb[20].mxu0  ;;  %v1866_v18 = vpop.f32.mrb[20].mxu1 }
 0x60a   :  { %v1873_v19 = vadd.f32 %v2735_v7, %v1825_v17  ;;  %v1827_v20 = vpop.f32.mrb[21].mxu0  ;;  %v1868_v21 = vpop.f32.mrb[21].mxu1  ;;  %v1875_v31 = vadd.f32 %v2737_v29, %v1866_v18 }
 0x60b   :  { %v1874_v22 = vadd.f32 %v2736_v16, %v1827_v20  ;;  %v1829_v23 = vpop.f32.mrb[22].mxu0  ;;  %v1870_v24 = vpop.f32.mrb[22].mxu1  ;;  %v1876_v28 = vadd.f32 %v2738_v27, %v1868_v21  ;;  %v2815_v21 = vld [vmem:[%s3835_s0 + $0xe0] sm:$0xff] }
 0x60c   :  { %v2771_v25 = vmul.f32 -1.442695, %v1873_v19  ;;  %v1830_v45 = vpop.f32.mrb[23].mxu0  ;;  %v1871_v26 = vpop.f32.mrb[23].mxu1 }
 0x60d   :  { %v2772_v46 = vmul.f32 -1.442695, %v1874_v22  ;;  %v2773_v30 = vmul.f32 -1.442695, %v1876_v28  ;;  %v2816_v22 = vld [vmem:[%s3835_s0 + $0xe8] sm:$0xff] }
 0x60e   :  { %3033 = vpow2.f32 %v2771_v25 }
 0x60f   :  { %3035 = vpow2.f32 %v2772_v46 }
 0x610   :  { %3037 = vpow2.f32 %v2773_v30 }
 0x611   :  { %3039 = vtanh.f32 %v1875_v31 }
 0x618   :  { %v3034_v32 = vpop.eup %3033 }
 0x619   :  { %v3036_v41 = vpop.eup %3035  ;;  %v1880_v42 = vadd.f32 1.0, %v3034_v32 }
 0x61a   :  { %v1886_v43 = vadd.f32 1.0, %v3036_v41  ;;  %v3038_v44 = vpop.eup %3037  ;;  %v2818_v41 = vld [vmem:[%s3835_s0 + $0xf8] sm:$0xff] }
 0x61b   :  { %3041 = vrcp.f32 %v1880_v42  ;;  %v3040_v8 = vpop.eup %3039  ;;  %v1893_v12 = vadd.f32 1.0, %v3038_v44 }
 0x61c   :  { %3043 = vrcp.f32 %v1886_v43  ;;  %v2817_v43 = vld [vmem:[%s3835_s0 + $0xf0] sm:$0xff] }
 0x61d   :  { %3045 = vrcp.f32 %v1893_v12 }
 0x625   :  { %v3042_v9 = vpop.eup %3041 }
 0x626   :  { %v3044_v10 = vpop.eup %3043  ;;  %v1897_v11 = vmul.f32 %v3042_v9, %v3040_v8 }
 0x627   :  { %v1896_v13 = vmul.f32 %v3044_v10, %v3712_v33  ;;  %v3046_v15 = vpop.eup %3045 }
 0x629   :  { %v3765_v14 = vadd.f32 %v1897_v11, %v1896_v13 }
 0x62b   :  { %3047 = vtanh.f32 %v3765_v14 }
 0x635   :  { %v3048_v7 = vpop.eup %3047 }
 0x636   :  { %v1900_v16 = vmul.f32 %v3048_v7, %v3046_v15 }
 0x638   :  { %v1903_v17 = vpack.c.bf16 %v1900_v16, %v1900_v16 }
 0x63a   :  { %2774 = vst [vmem:[%s3836_s2 + $0x14] sm:$0xf] %v1903_v17  ;;  %2139 = vmatmul.mubr.bf16.vlgmr.msra.gmra.mrb[24].mxu0 %v1903_v17  ;;  %2180 = vmatmul.mubr.bf16.vlgmr.msra.gmra.mrb[24].mxu1 %v1903_v17 }
 0x63b   :  { %2422 = vmatpush1.bf16.msra.mxu0 %v3465_v47  ;;  %2463 = vmatpush1.bf16.msra.mxu1 %v3470_v48  ;;  %v2776_v47 = vld [vmem:[%s3835_s0 + $0xc8] sm:$0xff] }
 0x63c   :  { %2423 = vmatprep.subr.bf16.mxu0 %v3479_v0  ;;  %2464 = vmatprep.subr.bf16.mxu1 %v3484_v49 }
 0x63d   :  { %2453 = vmatprep.mubr.bf16.mxu0 %v3081_v1  ;;  %2494 = vmatprep.mubr.bf16.mxu1 %v3081_v1  ;;  %v2775_v1 = vld [vmem:[%s3835_s0 + $0xc0] sm:$0xff] }
 0x63f   :  { %2424 = vmatpush1.bf16.msra.mxu0 %v3489_v6  ;;  %2465 = vmatpush1.bf16.msra.mxu1 %v3494_v50 }
 0x640   :  { %2425 = vmatprep.subr.bf16.mxu0 %v3503_v51  ;;  %2466 = vmatprep.subr.bf16.mxu1 %v3508_v52 }
 0x643   :  { %2426 = vmatpush1.bf16.msra.mxu0 %v3513_v53  ;;  %2467 = vmatpush1.bf16.msra.mxu1 %v3518_v54 }
 0x644   :  { %2427 = vmatprep.subr.bf16.mxu0 %v3527_v55  ;;  %2468 = vmatprep.subr.bf16.mxu1 %v3532_v56 }
 0x647   :  { %2428 = vmatpush1.bf16.msra.mxu0 %v3537_v57  ;;  %2469 = vmatpush1.bf16.msra.mxu1 %v3542_v58  ;;  %v2778_v58 = vld [vmem:[%s3835_s0 + $0xd8] sm:$0xff] }
 0x648   :  { %2429 = vmatprep.subr.bf16.mxu0 %v3556_v60  ;;  %2470 = vmatprep.subr.bf16.mxu1 %v3566_v62  ;;  %v2777_v60 = vld [vmem:[%s3835_s0 + $0xd0] sm:$0xff] }
 0x64b   :  { %2430 = vmatpush1.bf16.msra.mxu0 %v3551_v59  ;;  %2471 = vmatpush1.bf16.msra.mxu1 %v3561_v61 }
 0x64c   :  { %2431 = vmatprep.subr.bf16.mxu0 %v3571_v63  ;;  %2472 = vmatprep.subr.bf16.mxu1 %v3577_v34 }
 0x64f   :  { %2432 = vmatpush1.bf16.msra.mxu0 %v3584_v35  ;;  %2473 = vmatpush1.bf16.msra.mxu1 %v3591_v36 }
 0x650   :  { %2433 = vmatprep.subr.bf16.mxu0 %v3596_v37  ;;  %2474 = vmatprep.subr.bf16.mxu1 %v3602_v38 }
 0x653   :  { %2434 = vmatpush1.bf16.msra.mxu0 %v3608_v39  ;;  %2475 = vmatpush1.bf16.msra.mxu1 %v3615_v40 }
 0x654   :  { %2435 = vmatprep.subr.bf16.mxu0 %v3620_v2  ;;  %2476 = vmatprep.subr.bf16.mxu1 %v3626_v3 }
 0x657   :  { %2436 = vmatpush1.bf16.msra.mxu0 %v3632_v4  ;;  %2477 = vmatpush1.bf16.msra.mxu1 %v3639_v5 }
 0x70d   :  { %v2140_v48 = vpop.f32.mrb[24].mxu0  ;;  %v2181_v0 = vpop.f32.mrb[24].mxu1 }
 0x70e   :  { %v2188_v49 = vadd.f32 %v2775_v1, %v2140_v48  ;;  %v2142_v6 = vpop.f32.mrb[25].mxu0  ;;  %v2183_v50 = vpop.f32.mrb[25].mxu1  ;;  %v2190_v62 = vadd.f32 %v2777_v60, %v2181_v0 }
 0x70f   :  { %v2189_v51 = vadd.f32 %v2776_v47, %v2142_v6  ;;  %v2144_v52 = vpop.f32.mrb[26].mxu0  ;;  %v2185_v53 = vpop.f32.mrb[26].mxu1  ;;  %v2191_v59 = vadd.f32 %v2778_v58, %v2183_v50 }
 0x710   :  { %v2811_v54 = vmul.f32 -1.442695, %v2188_v49  ;;  %v2145_v55 = vpop.f32.mrb[27].mxu0  ;;  %v2186_v56 = vpop.f32.mrb[27].mxu1 }
 0x711   :  { %v2812_v57 = vmul.f32 -1.442695, %v2189_v51  ;;  %v2813_v61 = vmul.f32 -1.442695, %v2191_v59 }
 0x712   :  { %3049 = vpow2.f32 %v2811_v54 }
 0x713   :  { %3051 = vpow2.f32 %v2812_v57 }
 0x714   :  { %3053 = vpow2.f32 %v2813_v61 }
 0x715   :  { %3055 = vtanh.f32 %v2190_v62 }
 0x71c   :  { %v3050_v63 = vpop.eup %3049 }
 0x71d   :  { %v3052_v34 = vpop.eup %3051  ;;  %v2195_v35 = vadd.f32 1.0, %v3050_v63 }
 0x71e   :  { %v2201_v36 = vadd.f32 1.0, %v3052_v34  ;;  %v3054_v37 = vpop.eup %3053 }
 0x71f   :  { %3057 = vrcp.f32 %v2195_v35  ;;  %v3056_v38 = vpop.eup %3055  ;;  %v2208_v3 = vadd.f32 1.0, %v3054_v37 }
 0x720   :  { %3059 = vrcp.f32 %v2201_v36 }
 0x721   :  { %3061 = vrcp.f32 %v2208_v3 }
 0x729   :  { %v3058_v39 = vpop.eup %3057 }
 0x72a   :  { %v3060_v40 = vpop.eup %3059  ;;  %v2212_v2 = vmul.f32 %v3058_v39, %v3056_v38 }
 0x72b   :  { %v2211_v4 = vmul.f32 %v3060_v40, %v3765_v14  ;;  %v3062_v33 = vpop.eup %3061 }
 0x72d   :  { %v2213_v5 = vadd.f32 %v2212_v2, %v2211_v4 }
 0x72f   :  { %3063 = vtanh.f32 %v2213_v5 }
 0x739   :  { %v3064_v18 = vpop.eup %3063 }
 0x73a   :  { %v2215_v19 = vmul.f32 %v3064_v18, %v3062_v33 }
 0x73c   :  { %v2218_v20 = vpack.c.bf16 %v2215_v19, %v2215_v19 }
 0x73e   :  { %2814 = vst [vmem:[%s3836_s2 + $0x18] sm:$0xf] %v2218_v20  ;;  %2454 = vmatmul.mubr.bf16.vlgmr.msra.gmra.mrb[28].mxu0 %v2218_v20  ;;  %2495 = vmatmul.mubr.bf16.vlgmr.msra.gmra.mrb[28].mxu1 %v2218_v20 }
 0x811   :  { %v2455_v23 = vpop.f32.mrb[28].mxu0  ;;  %v2496_v24 = vpop.f32.mrb[28].mxu1 }
 0x812   :  { %v2503_v25 = vadd.f32 %v2815_v21, %v2455_v23  ;;  %v2457_v45 = vpop.f32.mrb[29].mxu0  ;;  %v2498_v26 = vpop.f32.mrb[29].mxu1  ;;  %v2505_v8 = vadd.f32 %v2817_v43, %v2496_v24 }
 0x813   :  { %v2504_v46 = vadd.f32 %v2816_v22, %v2457_v45  ;;  %v2459_v27 = vpop.f32.mrb[30].mxu0  ;;  %v2500_v28 = vpop.f32.mrb[30].mxu1  ;;  %v2506_v42 = vadd.f32 %v2818_v41, %v2498_v26 }
 0x814   :  { %v2851_v29 = vmul.f32 -1.442695, %v2503_v25  ;;  %v2460_v30 = vpop.f32.mrb[31].mxu0  ;;  %v2501_v31 = vpop.f32.mrb[31].mxu1 }
 0x815   :  { %v2852_v32 = vmul.f32 -1.442695, %v2504_v46  ;;  %v2853_v44 = vmul.f32 -1.442695, %v2506_v42 }
 0x816   :  { %3065 = vpow2.f32 %v2851_v29 }
 0x817   :  { %3067 = vpow2.f32 %v2852_v32 }
 0x818   :  { %3069 = vpow2.f32 %v2853_v44 }
 0x819   :  { %3071 = vtanh.f32 %v2505_v8 }
 0x820   :  { %v3066_v9 = vpop.eup %3065 }
 0x821   :  { %v3068_v10 = vpop.eup %3067  ;;  %v2510_v11 = vadd.f32 1.0, %v3066_v9 }
 0x822   :  { %v2516_v12 = vadd.f32 1.0, %v3068_v10  ;;  %v3070_v13 = vpop.eup %3069 }
 0x823   :  { %3073 = vrcp.f32 %v2510_v11  ;;  %v3072_v14 = vpop.eup %3071  ;;  %v2523_v17 = vadd.f32 1.0, %v3070_v13 }
 0x824   :  { %3075 = vrcp.f32 %v2516_v12 }
 0x825   :  { %3077 = vrcp.f32 %v2523_v17 }
 0x82d   :  { %v3074_v15 = vpop.eup %3073 }
 0x82e   :  { %v3076_v7 = vpop.eup %3075  ;;  %v2527_v16 = vmul.f32 %v3074_v15, %v3072_v14 }
 0x82f   :  { %v2526_v1 = vmul.f32 %v3076_v7, %v2213_v5  ;;  %v3078_v48 = vpop.eup %3077 }
 0x831   :  { %v2528_v47 = vadd.f32 %v2527_v16, %v2526_v1 }
 0x833   :  { %3079 = vtanh.f32 %v2528_v47 }
 0x83d   :  { %v3080_v0 = vpop.eup %3079 }
 0x83e   :  { %v2530_v49 = vmul.f32 %v3080_v0, %v3078_v48 }
 0x840   :  { %v2533_v6 = vpack.c.bf16 %v2530_v49, %v2530_v49 }
 0x842   :  { %2854 = vst [vmem:[%s3836_s2 + $0x1c] sm:$0xf] %v2533_v6 }

</bundles_post_ra>
